<compile_context>
chip_gen: v6e
topology: v6e:2x2x1
jax: 0.10.0
libtpu: 0.0.40
codegen_flags: <defaults>
</compile_context>

<pallas_src>
from functools import partial

import numpy as np
import jax
import jax.numpy as jnp
from jax import lax
from jax.experimental import pallas as pl
from jax.experimental.pallas import tpu as pltpu

EPS = 1e-5                     # nn.BatchNorm2d default
CONV_DTYPE = jnp.bfloat16      # MXU operand dtype; set jnp.float32 for exact f32 conv


def _resblock_kernel(x_ref, w1_ref, w2_ref, mstat_ref, gb_ref,
                     o_ref,
                     y1_scr, y2_scr, stats1_scr, stats2_scr,
                     sc1_scr, sh1_scr, sc2_scr, sh2_scr,
                     *, img_h):
    """Phased ResBlock kernel.

    x_ref     : (M, W*Cin)  batch-stacked lane-dense rows (M = Bt*H), f32
    w1_ref    : (3, W*Cin,  W*Cout) banded conv1 weights (CONV_DTYPE)
    w2_ref    : (3, W*Cout, W*Cout) banded conv2 weights (CONV_DTYPE)
    mstat_ref : (W*Cout, W*Cout) f32 lane-group averaging matrix
    gb_ref    : (4, W*Cout) f32 rows [gamma1, beta1, gamma2, beta2] (lane-tiled)
    o_ref     : (M, W*Cout)
    y1_scr/y2_scr : (nb, M, W*Cout) f32 raw conv outputs (persist across grid)
    stats*_scr    : (2, W*Cout) f32 [sum; sumsq] accumulators
    sc*/sh*_scr   : (1, W*Cout) f32 cached BN scale / shift
    """
    phase = pl.program_id(0)
    b = pl.program_id(1)
    m_rows = x_ref.shape[0]

    rows = lax.broadcasted_iota(jnp.int32, (m_rows, 1), 0)
    first_row = (rows % img_h) == 0            # top row of each stacked image
    last_row = (rows % img_h) == (img_h - 1)   # bottom row of each stacked image

    def conv3x3(xin, w_ref):
        # xin: (M, K) f32.  Vertical taps via XLU roll + boundary-row masking
        # (SAME padding and no cross-image bleed); W taps + W padding live in
        # the banded weight blocks -> three accumulating MXU matmuls.
        up = jnp.where(first_row, 0.0, pltpu.roll(xin, shift=1, axis=0))
        dn = jnp.where(last_row, 0.0, pltpu.roll(xin, shift=m_rows - 1, axis=0))
        cd = w_ref.dtype
        acc = jnp.dot(up.astype(cd), w_ref[0], preferred_element_type=jnp.float32)
        acc = acc + jnp.dot(xin.astype(cd), w_ref[1], preferred_element_type=jnp.float32)
        acc = acc + jnp.dot(dn.astype(cd), w_ref[2], preferred_element_type=jnp.float32)
        return acc

    def batch_stats(y):
        # Per-lane [sum; sumsq] over this batch tile's rows -> (2, W*Cout).
        return jnp.concatenate([jnp.sum(y, axis=0, keepdims=True),
                                jnp.sum(y * y, axis=0, keepdims=True)], axis=0)

    def bn_scale_shift(stats_ref, gamma, beta):
        # One tiny f32 matmul does the cross-lane-group (W) reduction of the
        # batch sums AND re-broadcasts per-channel mean / E[x^2] to every lane.
        st = jnp.dot(stats_ref[...], mstat_ref[...],
                     preferred_element_type=jnp.float32)          # (2, W*Cout)
        mean = st[0:1, :]
        var = st[1:2, :] - mean * mean
        # TODO(synk): one-pass E[x^2]-mean^2 cancels badly when mean >> std;
        # use a shifted/compensated accumulation for non-toy activations.
        scale = gamma * lax.rsqrt(var + EPS)
        return scale, beta - mean * scale

    @pl.when(jnp.logical_and(phase == 0, b == 0))
    def _init_stats():
        stats1_scr[...] = jnp.zeros_like(stats1_scr)
        stats2_scr[...] = jnp.zeros_like(stats2_scr)

    @pl.when(phase == 0)                       # conv1 + batch-stats accumulation
    def _phase0():
        y1 = conv3x3(x_ref[...], w1_ref)
        y1_scr[b] = y1
        stats1_scr[...] += batch_stats(y1)

    @pl.when(phase == 1)                       # BN1 + ReLU + conv2 + stats
    def _phase1():
        @pl.when(b == 0)                       # hoist BN1 params out of the b loop
        def _():
            sc, sh = bn_scale_shift(stats1_scr, gb_ref[0:1, :], gb_ref[1:2, :])
            sc1_scr[...] = sc
            sh1_scr[...] = sh
        z = jnp.maximum(y1_scr[b] * sc1_scr[...] + sh1_scr[...], 0.0)
        y2 = conv3x3(z, w2_ref)
        y2_scr[b] = y2
        stats2_scr[...] += batch_stats(y2)

    @pl.when(phase == 2)                       # BN2 + residual add + ReLU
    def _phase2():
        @pl.when(b == 0)                       # hoist BN2 params out of the b loop
        def _():
            sc, sh = bn_scale_shift(stats2_scr, gb_ref[2:3, :], gb_ref[3:4, :])
            sc2_scr[...] = sc
            sh2_scr[...] = sh
        out = y2_scr[b] * sc2_scr[...] + sh2_scr[...] + x_ref[...]
        o_ref[...] = jnp.maximum(out, 0.0).astype(o_ref.dtype)


def _banded_conv_blocks(w_hwio, width):
    """Expand (3,3,Cin,Cout) HWIO weights into (3, width*Cin, width*Cout):
    for each vertical tap dh, a block-banded matrix that applies the three
    horizontal taps (and SAME zero padding in W) to a lane-dense
    (rows, width*Cin) slab with a single matmul."""
    kh, kw, cin, cout = w_hwio.shape
    blocks = []
    for dh in range(kh):
        m = jnp.zeros((width * cin, width * cout), jnp.float32)
        for dw in range(kw):
            band = jnp.eye(width, width, k=1 - dw, dtype=jnp.float32)
            m = m + jnp.kron(band, w_hwio[dh, dw].astype(jnp.float32))
        blocks.append(m)
    return jnp.stack(blocks, axis=0)


def _pick_batch_tile(batch, height, max_rows=128):
    """Largest divisor of `batch` giving an 8-aligned row tile <= max_rows
    (max_rows=128 targets the v5e MXU; 256 fills v6e/v7x)."""
    best = 1
    for bt in range(1, batch + 1):
        if batch % bt == 0 and (bt * height) % 8 == 0 and bt * height <= max_rows:
            best = bt
    return best


def res_block_type1(x_nhwc, params, *, batch_tile=None, conv_dtype=CONV_DTYPE):
    """x_nhwc: (B, H, W, Cin) float32; requires in_channels == out_channels."""
    B, H, W, Cin = x_nhwc.shape
    Cout = params["w1"].shape[-1]
    if Cin != Cout:
        raise ValueError("residual add requires in_channels == out_channels")
    Wci, Wco = W * Cin, W * Cout

    Bt = batch_tile if batch_tile is not None else _pick_batch_tile(B, H)
    if B % Bt or (Bt * H) % 8:
        raise ValueError("batch tile must divide B and give 8-aligned row tiles")
    nb = B // Bt
    M = Bt * H                                    # MXU M per conv matmul

    x2d = x_nhwc.reshape(B * H, Wci)              # lane-dense rows (free reshape)
    w1b = _banded_conv_blocks(params["w1"], W).astype(conv_dtype)
    w2b = _banded_conv_blocks(params["w2"], W).astype(conv_dtype)
    # (stats @ mstat)[w*Cout + c] = (1/(B*H*W)) * sum_{w'} stats[w'*Cout + c]
    mstat = jnp.kron(jnp.ones((W, W), jnp.float32),
                     jnp.eye(Cout, dtype=jnp.float32)) / float(B * H * W)
    gb = jnp.stack([jnp.tile(params["g1"].reshape(-1), W),
                    jnp.tile(params["b1"].reshape(-1), W),
                    jnp.tile(params["g2"].reshape(-1), W),
                    jnp.tile(params["b2"].reshape(-1), W)], axis=0)   # (4, Wco)

    # x is only needed by phases 0 (conv1) and 2 (residual).  During phase 1
    # the block index is pinned to the last fetched block -> no DMA is issued.
    x_index = lambda p, b: (jnp.where(p == 1, nb - 1, b), 0)
    # The output is produced only in phase 2; pinning its index to 0 during
    # phases 0/1 defers all HBM write-back until valid data exists and cuts
    # output traffic from 3*nb to nb block writes.
    o_index = lambda p, b: (jnp.where(p == 2, b, 0), 0)

    # Accurate VMEM budget + modest headroom (review: size for v7x's 64 MiB).
    wbytes = jnp.dtype(conv_dtype).itemsize
    lane = lambda n: ((n + 127) // 128) * 128
    vmem_needed = (
        2 * M * lane(Wci) * 4 + 2 * M * lane(Wco) * 4      # x / out (double-buffered)
        + 2 * 3 * lane(Wci) * lane(Wco) * wbytes           # conv1 banded blocks
        + 2 * 3 * lane(Wco) * lane(Wco) * wbytes           # conv2 banded blocks
        + 2 * lane(Wco) * lane(Wco) * 4                    # stats reduce matrix
        + 2 * 8 * lane(Wco) * 4                            # gamma/beta rows
        + 2 * nb * M * lane(Wco) * 4                       # y1_scr + y2_scr
        + 8 * 8 * lane(Wco) * 4)                           # stats / BN scratch
    vmem_limit = min(int(vmem_needed * 1.25) + (2 << 20), 60 << 20)

    grid_spec = pltpu.PrefetchScalarGridSpec(
        num_scalar_prefetch=0,
        grid=(3, nb),                         # (phase, batch tile); phase slowest
        in_specs=[
            pl.BlockSpec((M, Wci), x_index),                        # x rows
            pl.BlockSpec((3, Wci, Wco), lambda p, b: (0, 0, 0)),    # conv1 banded
            pl.BlockSpec((3, Wco, Wco), lambda p, b: (0, 0, 0)),    # conv2 banded
            pl.BlockSpec((Wco, Wco), lambda p, b: (0, 0)),          # stats matrix
            pl.BlockSpec((4, Wco), lambda p, b: (0, 0)),            # gamma/beta
        ],
        out_specs=pl.BlockSpec((M, Wco), o_index),
        scratch_shapes=[
            pltpu.VMEM((nb, M, Wco), jnp.float32),   # raw conv1 output (all tiles)
            pltpu.VMEM((nb, M, Wco), jnp.float32),   # raw conv2 output (all tiles)
            pltpu.VMEM((2, Wco), jnp.float32),       # conv1 [sum; sumsq]
            pltpu.VMEM((2, Wco), jnp.float32),       # conv2 [sum; sumsq]
            pltpu.VMEM((1, Wco), jnp.float32),       # BN1 scale
            pltpu.VMEM((1, Wco), jnp.float32),       # BN1 shift
            pltpu.VMEM((1, Wco), jnp.float32),       # BN2 scale
            pltpu.VMEM((1, Wco), jnp.float32),       # BN2 shift
        ],
    )

    out2d = pl.pallas_call(
        partial(_resblock_kernel, img_h=H),
        out_shape=jax.ShapeDtypeStruct((B * H, Wco), x_nhwc.dtype),
        grid_spec=grid_spec,
        compiler_params=pltpu.CompilerParams(
            dimension_semantics=("arbitrary", "arbitrary"),
            vmem_limit_bytes=vmem_limit),
    )(x2d, w1b, w2b, mstat, gb)
    return out2d.reshape(B, H, W, Cout)


def reference_forward(x_nhwc, params, conv_dtype=jnp.float32):
    """Pure-JAX reference.  conv_dtype mirrors the kernel's MXU operand cast."""
    def conv(x, w):
        return lax.conv_general_dilated(
            x.astype(conv_dtype), w.astype(conv_dtype),
            window_strides=(1, 1), padding="SAME",
            dimension_numbers=("NHWC", "HWIO", "NHWC"),
            preferred_element_type=jnp.float32)

    def bn(x, g, b):
        mean = x.mean(axis=(0, 1, 2))
        var = ((x - mean) ** 2).mean(axis=(0, 1, 2))
        return (x - mean) * lax.rsqrt(var + EPS) * g.reshape(-1) + b.reshape(-1)

    y = jnp.maximum(bn(conv(x_nhwc, params["w1"]), params["g1"], params["b1"]), 0.0)
    z = bn(conv(y, params["w2"]), params["g2"], params["b2"])
    return jnp.maximum(z + x_nhwc, 0.0)


def init_params(key, cin, cout):
    k1, k2, k3, k4, k5, k6 = jax.random.split(key, 6)
    return {
        "w1": 0.1 * jax.random.normal(k1, (3, 3, cin, cout), jnp.float32),
        "g1": 1.0 + 0.1 * jax.random.normal(k2, (cout,), jnp.float32),
        "b1": 0.1 * jax.random.normal(k3, (cout,), jnp.float32),
        "w2": 0.1 * jax.random.normal(k4, (3, 3, cout, cout), jnp.float32),
        "g2": 1.0 + 0.1 * jax.random.normal(k5, (cout,), jnp.float32),
        "b2": 0.1 * jax.random.normal(k6, (cout,), jnp.float32),
    }


if __name__ == "__main__":
    key = jax.random.PRNGKey(0)
    # W*C = 128 -> exactly one lane width.  Bt=8, H=16 -> M=128 rows per matmul
    # and two batch tiles, exercising the multi-tile stats / DMA-elision paths.
    B, C, H, W = 16, 8, 16, 16
    kx, kp = jax.random.split(key)

    # PyTorch-style NCHW input, transposed to the kernel's NHWC layout.
    x_nchw = jax.random.normal(kx, (B, C, H, W), jnp.float32)
    x_nhwc = jnp.transpose(x_nchw, (0, 2, 3, 1))

    params = init_params(kp, C, C)

    out = jax.block_until_ready(res_block_type1(x_nhwc, params))
    assert out.shape == (B, H, W, C)

    # Tight check against a reference using the same conv operand dtype as the
    # kernel's MXU inputs (bf16 operands, f32 accumulate).
    ref_matched = jax.block_until_ready(
        reference_forward(x_nhwc, params, conv_dtype=CONV_DTYPE))
    np.testing.assert_allclose(np.asarray(out), np.asarray(ref_matched),
                               atol=1e-2, rtol=1e-2)
    # Loose sanity check against pure-f32 module semantics.
    ref_f32 = jax.block_until_ready(reference_forward(x_nhwc, params))
    np.testing.assert_allclose(np.asarray(out), np.asarray(ref_f32),
                               atol=1e-1, rtol=1e-1)

    print("KERNEL_OK")
</pallas_src>

<mosaic_0001>
module attributes {stable_mosaic.version = 11 : i64} {
  func.func @_resblock_kernel(%arg0: i32, %arg1: i32, %arg2: memref<128x128xf32, #tpu.memory_space<vmem>>, %arg3: memref<3x128x128xbf16, #tpu.memory_space<vmem>>, %arg4: memref<3x128x128xbf16, #tpu.memory_space<vmem>>, %arg5: memref<128x128xf32, #tpu.memory_space<vmem>>, %arg6: memref<4x128xf32, #tpu.memory_space<vmem>>, %arg7: memref<128x128xf32, #tpu.memory_space<vmem>>, %arg8: memref<2x128x128xf32, #tpu.memory_space<vmem>>, %arg9: memref<2x128x128xf32, #tpu.memory_space<vmem>>, %arg10: memref<2x128xf32, #tpu.memory_space<vmem>>, %arg11: memref<2x128xf32, #tpu.memory_space<vmem>>, %arg12: memref<1x128xf32, #tpu.memory_space<vmem>>, %arg13: memref<1x128xf32, #tpu.memory_space<vmem>>, %arg14: memref<1x128xf32, #tpu.memory_space<vmem>>, %arg15: memref<1x128xf32, #tpu.memory_space<vmem>>) attributes {dimension_semantics = [#tpu.dimension_semantics<arbitrary>, #tpu.dimension_semantics<arbitrary>], iteration_bounds = array<i64: 3, 2>, scalar_prefetch = 0 : i64, scratch_operands = 8 : i64, tpu.core_type = #tpu.core_type<tc>, window_params = [{transform_indices = @transform_0, window_bounds = array<i64: 128, 128>}, {pipeline_mode = #tpu.pipeline_mode<synchronous>, transform_indices = @transform_1, window_bounds = array<i64: 3, 128, 128>}, {pipeline_mode = #tpu.pipeline_mode<synchronous>, transform_indices = @transform_2, window_bounds = array<i64: 3, 128, 128>}, {pipeline_mode = #tpu.pipeline_mode<synchronous>, transform_indices = @transform_3, window_bounds = array<i64: 128, 128>}, {pipeline_mode = #tpu.pipeline_mode<synchronous>, transform_indices = @transform_4, window_bounds = array<i64: 4, 128>}, {transform_indices = @transform_5, window_bounds = array<i64: 128, 128>}]} {
    %0 = tpu.iota {dimensions = array<i32: 0>} : vector<128x1xi32>
    %c16_i32 = arith.constant 16 : i32
    %c0_i32 = arith.constant 0 : i32
    %1 = arith.cmpi eq, %c16_i32, %c0_i32 : i32
    %c1_i32 = arith.constant 1 : i32
    %2 = arith.select %1, %c1_i32, %c16_i32 : i32
    %3 = vector.broadcast %2 : i32 to vector<128x1xi32>
    %4 = arith.remsi %0, %3 : vector<128x1xi32>
    %c0_i32_0 = arith.constant 0 : i32
    %5 = vector.broadcast %c0_i32_0 : i32 to vector<128x1xi32>
    %6 = arith.cmpi ne, %4, %5 : vector<128x1xi32>
    %c0_i32_1 = arith.constant 0 : i32
    %7 = vector.broadcast %c0_i32_1 : i32 to vector<128x1xi32>
    %8 = arith.cmpi slt, %4, %7 : vector<128x1xi32>
    %c0_i32_2 = arith.constant 0 : i32
    %9 = arith.cmpi slt, %2, %c0_i32_2 : i32
    %10 = vector.broadcast %9 : i1 to vector<128x1xi1>
    %11 = vector.broadcast %10 : vector<128x1xi1> to vector<128x1xi1>
    %12 = arith.xori %8, %11 : vector<128x1xi1>
    %13 = arith.andi %12, %6 : vector<128x1xi1>
    %14 = vector.broadcast %2 : i32 to vector<128x1xi32>
    %15 = arith.addi %4, %14 : vector<128x1xi32>
    %16 = arith.select %13, %15, %4 : vector<128x1xi1>, vector<128x1xi32>
    %c0_i32_3 = arith.constant 0 : i32
    %17 = vector.broadcast %c0_i32_3 : i32 to vector<128x1xi32>
    %18 = arith.cmpi eq, %16, %17 : vector<128x1xi32>
    %c16_i32_4 = arith.constant 16 : i32
    %c0_i32_5 = arith.constant 0 : i32
    %19 = arith.cmpi eq, %c16_i32_4, %c0_i32_5 : i32
    %c1_i32_6 = arith.constant 1 : i32
    %20 = arith.select %19, %c1_i32_6, %c16_i32_4 : i32
    %21 = vector.broadcast %20 : i32 to vector<128x1xi32>
    %22 = arith.remsi %0, %21 : vector<128x1xi32>
    %c0_i32_7 = arith.constant 0 : i32
    %23 = vector.broadcast %c0_i32_7 : i32 to vector<128x1xi32>
    %24 = arith.cmpi ne, %22, %23 : vector<128x1xi32>
    %c0_i32_8 = arith.constant 0 : i32
    %25 = vector.broadcast %c0_i32_8 : i32 to vector<128x1xi32>
    %26 = arith.cmpi slt, %22, %25 : vector<128x1xi32>
    %c0_i32_9 = arith.constant 0 : i32
    %27 = arith.cmpi slt, %20, %c0_i32_9 : i32
    %28 = vector.broadcast %27 : i1 to vector<128x1xi1>
    %29 = vector.broadcast %28 : vector<128x1xi1> to vector<128x1xi1>
    %30 = arith.xori %26, %29 : vector<128x1xi1>
    %31 = arith.andi %30, %24 : vector<128x1xi1>
    %32 = vector.broadcast %20 : i32 to vector<128x1xi32>
    %33 = arith.addi %22, %32 : vector<128x1xi32>
    %34 = arith.select %31, %33, %22 : vector<128x1xi1>, vector<128x1xi32>
    %c15_i32 = arith.constant 15 : i32
    %35 = vector.broadcast %c15_i32 : i32 to vector<128x1xi32>
    %36 = arith.cmpi eq, %34, %35 : vector<128x1xi32>
    %c0_i32_10 = arith.constant 0 : i32
    %37 = arith.cmpi eq, %arg0, %c0_i32_10 : i32
    %c0_i32_11 = arith.constant 0 : i32
    %38 = arith.cmpi eq, %arg1, %c0_i32_11 : i32
    %39 = arith.andi %37, %38 : i1
    %40 = arith.extui %39 : i1 to i32
    %c0_i32_12 = arith.constant 0 : i32
    %41 = arith.cmpi ne, %40, %c0_i32_12 : i32
    scf.if %41 {
      %cst = arith.constant 0.000000e+00 : f32
      %51 = vector.broadcast %cst : f32 to vector<2x128xf32>
      %c0 = arith.constant 0 : index
      %c0_18 = arith.constant 0 : index
      %52 = vector.load %arg10[%c0, %c0_18] : memref<2x128xf32, #tpu.memory_space<vmem>>, vector<2x128xf32>
      tpu.vector_store %arg10[%c0, %c0_18], %51 {strides = array<i32>} : memref<2x128xf32, #tpu.memory_space<vmem>>, vector<2x128xf32>,
      %cst_19 = arith.constant 0.000000e+00 : f32
      %53 = vector.broadcast %cst_19 : f32 to vector<2x128xf32>
      %c0_20 = arith.constant 0 : index
      %c0_21 = arith.constant 0 : index
      %54 = vector.load %arg11[%c0_20, %c0_21] : memref<2x128xf32, #tpu.memory_space<vmem>>, vector<2x128xf32>
      tpu.vector_store %arg11[%c0_20, %c0_21], %53 {strides = array<i32>} : memref<2x128xf32, #tpu.memory_space<vmem>>, vector<2x128xf32>,
    } else {
    }
    %c0_i32_13 = arith.constant 0 : i32
    %42 = arith.cmpi eq, %arg0, %c0_i32_13 : i32
    %43 = arith.extui %42 : i1 to i32
    %c0_i32_14 = arith.constant 0 : i32
    %44 = arith.cmpi ne, %43, %c0_i32_14 : i32
    scf.if %44 {
      %c0 = arith.constant 0 : index
      %c0_18 = arith.constant 0 : index
      %51 = vector.load %arg2[%c0, %c0_18] : memref<128x128xf32, #tpu.memory_space<vmem>>, vector<128x128xf32>
      %c1_i32_19 = arith.constant 1 : i32
      %52 = tpu.dynamic_rotate %51 by %c1_i32_19 dim 0 : vector<128x128xf32>, i32 -> vector<128x128xf32>
      %cst = arith.constant 0.000000e+00 : f32
      %53 = vector.shape_cast %18 : vector<128x1xi1> to vector<128x1xi1>
      %54 = vector.broadcast %53 : vector<128x1xi1> to vector<128x128xi1>
      %55 = vector.broadcast %cst : f32 to vector<128x128xf32>
      %56 = arith.select %54, %55, %52 : vector<128x128xi1>, vector<128x128xf32>
      %c127_i32 = arith.constant 127 : i32
      %57 = tpu.dynamic_rotate %51 by %c127_i32 dim 0 : vector<128x128xf32>, i32 -> vector<128x128xf32>
      %cst_20 = arith.constant 0.000000e+00 : f32
      %58 = vector.shape_cast %36 : vector<128x1xi1> to vector<128x1xi1>
      %59 = vector.broadcast %58 : vector<128x1xi1> to vector<128x128xi1>
      %60 = vector.broadcast %cst_20 : f32 to vector<128x128xf32>
      %61 = arith.select %59, %60, %57 : vector<128x128xi1>, vector<128x128xf32>
      %62 = arith.truncf %56 : vector<128x128xf32> to vector<128x128xbf16>
      %c0_21 = arith.constant 0 : index
      %c0_22 = arith.constant 0 : index
      %c0_23 = arith.constant 0 : index
      %63 = vector.load %arg3[%c0_21, %c0_22, %c0_23] : memref<3x128x128xbf16, #tpu.memory_space<vmem>>, vector<1x128x128xbf16>
      %64 = vector.shape_cast %63 : vector<1x128x128xbf16> to vector<128x128xbf16>
      %cst_24 = arith.constant dense<0.000000e+00> : vector<128x128xf32>
      %65 = tpu.matmul %62, %64, %cst_24 {dimension_numbers = #tpu.dot_dimension_numbers<[1], [0], [0], [1], [0, 0, 1, 1], [], []>} : vector<128x128xbf16>, vector<128x128xbf16>, vector<128x128xf32> -> vector<128x128xf32>
      %66 = arith.truncf %51 : vector<128x128xf32> to vector<128x128xbf16>
      %c1 = arith.constant 1 : index
      %c0_25 = arith.constant 0 : index
      %c0_26 = arith.constant 0 : index
      %67 = vector.load %arg3[%c1, %c0_25, %c0_26] : memref<3x128x128xbf16, #tpu.memory_space<vmem>>, vector<1x128x128xbf16>
      %68 = vector.shape_cast %67 : vector<1x128x128xbf16> to vector<128x128xbf16>
      %cst_27 = arith.constant dense<0.000000e+00> : vector<128x128xf32>
      %69 = tpu.matmul %66, %68, %cst_27 {dimension_numbers = #tpu.dot_dimension_numbers<[1], [0], [0], [1], [0, 0, 1, 1], [], []>} : vector<128x128xbf16>, vector<128x128xbf16>, vector<128x128xf32> -> vector<128x128xf32>
      %70 = arith.addf %65, %69 : vector<128x128xf32>
      %71 = arith.truncf %61 : vector<128x128xf32> to vector<128x128xbf16>
      %c2 = arith.constant 2 : index
      %c0_28 = arith.constant 0 : index
      %c0_29 = arith.constant 0 : index
      %72 = vector.load %arg3[%c2, %c0_28, %c0_29] : memref<3x128x128xbf16, #tpu.memory_space<vmem>>, vector<1x128x128xbf16>
      %73 = vector.shape_cast %72 : vector<1x128x128xbf16> to vector<128x128xbf16>
      %cst_30 = arith.constant dense<0.000000e+00> : vector<128x128xf32>
      %74 = tpu.matmul %71, %73, %cst_30 {dimension_numbers = #tpu.dot_dimension_numbers<[1], [0], [0], [1], [0, 0, 1, 1], [], []>} : vector<128x128xbf16>, vector<128x128xbf16>, vector<128x128xf32> -> vector<128x128xf32>
      %75 = arith.addf %70, %74 : vector<128x128xf32>
      %76 = arith.index_cast %arg1 : i32 to index
      %c0_31 = arith.constant 0 : index
      %c0_32 = arith.constant 0 : index
      %77 = vector.load %arg8[%76, %c0_31, %c0_32] : memref<2x128x128xf32, #tpu.memory_space<vmem>>, vector<1x128x128xf32>
      %78 = vector.shape_cast %77 : vector<1x128x128xf32> to vector<128x128xf32>
      %79 = vector.shape_cast %75 : vector<128x128xf32> to vector<1x128x128xf32>
      tpu.vector_store %arg8[%76, %c0_31, %c0_32], %79 {strides = array<i32>} : memref<2x128x128xf32, #tpu.memory_space<vmem>>, vector<1x128x128xf32>,
      %c0_33 = arith.constant 0 : index
      %c0_34 = arith.constant 0 : index
      %80 = vector.load %arg10[%c0_33, %c0_34] : memref<2x128xf32, #tpu.memory_space<vmem>>, vector<2x128xf32>
      %cst_35 = arith.constant dense<0.000000e+00> : vector<128xf32>
      %81 = vector.multi_reduction <add>, %75, %cst_35 [0] : vector<128x128xf32> to vector<128xf32>
      %82 = vector.shape_cast %81 : vector<128xf32> to vector<1x128xf32>
      %83 = arith.mulf %75, %75 : vector<128x128xf32>
      %cst_36 = arith.constant dense<0.000000e+00> : vector<128xf32>
      %84 = vector.multi_reduction <add>, %83, %cst_36 [0] : vector<128x128xf32> to vector<128xf32>
      %85 = vector.shape_cast %84 : vector<128xf32> to vector<1x128xf32>
      %86 = tpu.concatenate %82, %85 in 0 : vector<1x128xf32>, vector<1x128xf32> -> vector<2x128xf32>
      %87 = arith.addf %80, %86 : vector<2x128xf32>
      %c0_37 = arith.constant 0 : index
      %c0_38 = arith.constant 0 : index
      %88 = vector.load %arg10[%c0_37, %c0_38] : memref<2x128xf32, #tpu.memory_space<vmem>>, vector<2x128xf32>
      tpu.vector_store %arg10[%c0_37, %c0_38], %87 {strides = array<i32>} : memref<2x128xf32, #tpu.memory_space<vmem>>, vector<2x128xf32>,
    } else {
    }
    %c1_i32_15 = arith.constant 1 : i32
    %45 = arith.cmpi eq, %arg0, %c1_i32_15 : i32
    %46 = arith.extui %45 : i1 to i32
    %c0_i32_16 = arith.constant 0 : i32
    %47 = arith.cmpi ne, %46, %c0_i32_16 : i32
    scf.if %47 {
      %c0_i32_18 = arith.constant 0 : i32
      %51 = arith.cmpi eq, %arg1, %c0_i32_18 : i32
      %52 = arith.extui %51 : i1 to i32
      %c0_i32_19 = arith.constant 0 : i32
      %53 = arith.cmpi ne, %52, %c0_i32_19 : i32
      scf.if %53 {
        %c0_46 = arith.constant 0 : index
        %c0_47 = arith.constant 0 : index
        %102 = vector.load %arg6[%c0_46, %c0_47] : memref<4x128xf32, #tpu.memory_space<vmem>>, vector<1x128xf32>
        %c1_48 = arith.constant 1 : index
        %c0_49 = arith.constant 0 : index
        %103 = vector.load %arg6[%c1_48, %c0_49] : memref<4x128xf32, #tpu.memory_space<vmem>>, vector<1x128xf32>
        %c0_50 = arith.constant 0 : index
        %c0_51 = arith.constant 0 : index
        %104 = vector.load %arg10[%c0_50, %c0_51] : memref<2x128xf32, #tpu.memory_space<vmem>>, vector<2x128xf32>
        %c0_52 = arith.constant 0 : index
        %c0_53 = arith.constant 0 : index
        %105 = vector.load %arg5[%c0_52, %c0_53] : memref<128x128xf32, #tpu.memory_space<vmem>>, vector<128x128xf32>
        %cst_54 = arith.constant dense<0.000000e+00> : vector<2x128xf32>
        %106 = tpu.matmul %104, %105, %cst_54 {dimension_numbers = #tpu.dot_dimension_numbers<[1], [0], [0], [1], [0, 0, 1, 1], [], []>} : vector<2x128xf32>, vector<128x128xf32>, vector<2x128xf32> -> vector<2x128xf32>
        %107 = vector.extract_strided_slice %106 {offsets = [0, 0], sizes = [1, 128], strides = [1, 1]} : vector<2x128xf32> to vector<1x128xf32>
        %108 = vector.extract_strided_slice %106 {offsets = [1, 0], sizes = [1, 128], strides = [1, 1]} : vector<2x128xf32> to vector<1x128xf32>
        %109 = arith.mulf %107, %107 : vector<1x128xf32>
        %110 = arith.subf %108, %109 : vector<1x128xf32>
        %cst_55 = arith.constant 9.99999974E-6 : f32
        %111 = vector.broadcast %cst_55 : f32 to vector<1x128xf32>
        %112 = arith.addf %110, %111 : vector<1x128xf32>
        %113 = math.rsqrt %112 : vector<1x128xf32>
        %114 = arith.mulf %102, %113 : vector<1x128xf32>
        %115 = arith.mulf %107, %114 : vector<1x128xf32>
        %116 = arith.subf %103, %115 : vector<1x128xf32>
        %c0_56 = arith.constant 0 : index
        %c0_57 = arith.constant 0 : index
        %117 = vector.load %arg12[%c0_56, %c0_57] : memref<1x128xf32, #tpu.memory_space<vmem>>, vector<1x128xf32>
        tpu.vector_store %arg12[%c0_56, %c0_57], %114 {strides = array<i32>} : memref<1x128xf32, #tpu.memory_space<vmem>>, vector<1x128xf32>,
        %c0_58 = arith.constant 0 : index
        %c0_59 = arith.constant 0 : index
        %118 = vector.load %arg13[%c0_58, %c0_59] : memref<1x128xf32, #tpu.memory_space<vmem>>, vector<1x128xf32>
        tpu.vector_store %arg13[%c0_58, %c0_59], %116 {strides = array<i32>} : memref<1x128xf32, #tpu.memory_space<vmem>>, vector<1x128xf32>,
      } else {
      }
      %54 = arith.index_cast %arg1 : i32 to index
      %c0 = arith.constant 0 : index
      %c0_20 = arith.constant 0 : index
      %55 = vector.load %arg8[%54, %c0, %c0_20] : memref<2x128x128xf32, #tpu.memory_space<vmem>>, vector<1x128x128xf32>
      %56 = vector.shape_cast %55 : vector<1x128x128xf32> to vector<128x128xf32>
      %c0_21 = arith.constant 0 : index
      %c0_22 = arith.constant 0 : index
      %57 = vector.load %arg12[%c0_21, %c0_22] : memref<1x128xf32, #tpu.memory_space<vmem>>, vector<1x128xf32>
      %58 = vector.broadcast %57 : vector<1x128xf32> to vector<128x128xf32>
      %59 = arith.mulf %56, %58 : vector<128x128xf32>
      %c0_23 = arith.constant 0 : index
      %c0_24 = arith.constant 0 : index
      %60 = vector.load %arg13[%c0_23, %c0_24] : memref<1x128xf32, #tpu.memory_space<vmem>>, vector<1x128xf32>
      %61 = vector.broadcast %60 : vector<1x128xf32> to vector<128x128xf32>
      %62 = arith.addf %59, %61 : vector<128x128xf32>
      %cst = arith.constant 0.000000e+00 : f32
      %63 = vector.broadcast %cst : f32 to vector<128x128xf32>
      %64 = arith.maximumf %62, %63 : vector<128x128xf32>
      %c1_i32_25 = arith.constant 1 : i32
      %65 = tpu.dynamic_rotate %64 by %c1_i32_25 dim 0 : vector<128x128xf32>, i32 -> vector<128x128xf32>
      %cst_26 = arith.constant 0.000000e+00 : f32
      %66 = vector.shape_cast %18 : vector<128x1xi1> to vector<128x1xi1>
      %67 = vector.broadcast %66 : vector<128x1xi1> to vector<128x128xi1>
      %68 = vector.broadcast %cst_26 : f32 to vector<128x128xf32>
      %69 = arith.select %67, %68, %65 : vector<128x128xi1>, vector<128x128xf32>
      %c127_i32 = arith.constant 127 : i32
      %70 = tpu.dynamic_rotate %64 by %c127_i32 dim 0 : vector<128x128xf32>, i32 -> vector<128x128xf32>
      %cst_27 = arith.constant 0.000000e+00 : f32
      %71 = vector.shape_cast %36 : vector<128x1xi1> to vector<128x1xi1>
      %72 = vector.broadcast %71 : vector<128x1xi1> to vector<128x128xi1>
      %73 = vector.broadcast %cst_27 : f32 to vector<128x128xf32>
      %74 = arith.select %72, %73, %70 : vector<128x128xi1>, vector<128x128xf32>
      %75 = arith.truncf %69 : vector<128x128xf32> to vector<128x128xbf16>
      %c0_28 = arith.constant 0 : index
      %c0_29 = arith.constant 0 : index
      %c0_30 = arith.constant 0 : index
      %76 = vector.load %arg4[%c0_28, %c0_29, %c0_30] : memref<3x128x128xbf16, #tpu.memory_space<vmem>>, vector<1x128x128xbf16>
      %77 = vector.shape_cast %76 : vector<1x128x128xbf16> to vector<128x128xbf16>
      %cst_31 = arith.constant dense<0.000000e+00> : vector<128x128xf32>
      %78 = tpu.matmul %75, %77, %cst_31 {dimension_numbers = #tpu.dot_dimension_numbers<[1], [0], [0], [1], [0, 0, 1, 1], [], []>} : vector<128x128xbf16>, vector<128x128xbf16>, vector<128x128xf32> -> vector<128x128xf32>
      %79 = arith.truncf %64 : vector<128x128xf32> to vector<128x128xbf16>
      %c1 = arith.constant 1 : index
      %c0_32 = arith.constant 0 : index
      %c0_33 = arith.constant 0 : index
      %80 = vector.load %arg4[%c1, %c0_32, %c0_33] : memref<3x128x128xbf16, #tpu.memory_space<vmem>>, vector<1x128x128xbf16>
      %81 = vector.shape_cast %80 : vector<1x128x128xbf16> to vector<128x128xbf16>
      %cst_34 = arith.constant dense<0.000000e+00> : vector<128x128xf32>
      %82 = tpu.matmul %79, %81, %cst_34 {dimension_numbers = #tpu.dot_dimension_numbers<[1], [0], [0], [1], [0, 0, 1, 1], [], []>} : vector<128x128xbf16>, vector<128x128xbf16>, vector<128x128xf32> -> vector<128x128xf32>
      %83 = arith.addf %78, %82 : vector<128x128xf32>
      %84 = arith.truncf %74 : vector<128x128xf32> to vector<128x128xbf16>
      %c2 = arith.constant 2 : index
      %c0_35 = arith.constant 0 : index
      %c0_36 = arith.constant 0 : index
      %85 = vector.load %arg4[%c2, %c0_35, %c0_36] : memref<3x128x128xbf16, #tpu.memory_space<vmem>>, vector<1x128x128xbf16>
      %86 = vector.shape_cast %85 : vector<1x128x128xbf16> to vector<128x128xbf16>
      %cst_37 = arith.constant dense<0.000000e+00> : vector<128x128xf32>
      %87 = tpu.matmul %84, %86, %cst_37 {dimension_numbers = #tpu.dot_dimension_numbers<[1], [0], [0], [1], [0, 0, 1, 1], [], []>} : vector<128x128xbf16>, vector<128x128xbf16>, vector<128x128xf32> -> vector<128x128xf32>
      %88 = arith.addf %83, %87 : vector<128x128xf32>
      %89 = arith.index_cast %arg1 : i32 to index
      %c0_38 = arith.constant 0 : index
      %c0_39 = arith.constant 0 : index
      %90 = vector.load %arg9[%89, %c0_38, %c0_39] : memref<2x128x128xf32, #tpu.memory_space<vmem>>, vector<1x128x128xf32>
      %91 = vector.shape_cast %90 : vector<1x128x128xf32> to vector<128x128xf32>
      %92 = vector.shape_cast %88 : vector<128x128xf32> to vector<1x128x128xf32>
      tpu.vector_store %arg9[%89, %c0_38, %c0_39], %92 {strides = array<i32>} : memref<2x128x128xf32, #tpu.memory_space<vmem>>, vector<1x128x128xf32>,
      %c0_40 = arith.constant 0 : index
      %c0_41 = arith.constant 0 : index
      %93 = vector.load %arg11[%c0_40, %c0_41] : memref<2x128xf32, #tpu.memory_space<vmem>>, vector<2x128xf32>
      %cst_42 = arith.constant dense<0.000000e+00> : vector<128xf32>
      %94 = vector.multi_reduction <add>, %88, %cst_42 [0] : vector<128x128xf32> to vector<128xf32>
      %95 = vector.shape_cast %94 : vector<128xf32> to vector<1x128xf32>
      %96 = arith.mulf %88, %88 : vector<128x128xf32>
      %cst_43 = arith.constant dense<0.000000e+00> : vector<128xf32>
      %97 = vector.multi_reduction <add>, %96, %cst_43 [0] : vector<128x128xf32> to vector<128xf32>
      %98 = vector.shape_cast %97 : vector<128xf32> to vector<1x128xf32>
      %99 = tpu.concatenate %95, %98 in 0 : vector<1x128xf32>, vector<1x128xf32> -> vector<2x128xf32>
      %100 = arith.addf %93, %99 : vector<2x128xf32>
      %c0_44 = arith.constant 0 : index
      %c0_45 = arith.constant 0 : index
      %101 = vector.load %arg11[%c0_44, %c0_45] : memref<2x128xf32, #tpu.memory_space<vmem>>, vector<2x128xf32>
      tpu.vector_store %arg11[%c0_44, %c0_45], %100 {strides = array<i32>} : memref<2x128xf32, #tpu.memory_space<vmem>>, vector<2x128xf32>,
    } else {
    }
    %c2_i32 = arith.constant 2 : i32
    %48 = arith.cmpi eq, %arg0, %c2_i32 : i32
    %49 = arith.extui %48 : i1 to i32
    %c0_i32_17 = arith.constant 0 : i32
    %50 = arith.cmpi ne, %49, %c0_i32_17 : i32
    scf.if %50 {
      %c0_i32_18 = arith.constant 0 : i32
      %51 = arith.cmpi eq, %arg1, %c0_i32_18 : i32
      %52 = arith.extui %51 : i1 to i32
      %c0_i32_19 = arith.constant 0 : i32
      %53 = arith.cmpi ne, %52, %c0_i32_19 : i32
      scf.if %53 {
        %c2 = arith.constant 2 : index
        %c0_29 = arith.constant 0 : index
        %68 = vector.load %arg6[%c2, %c0_29] : memref<4x128xf32, #tpu.memory_space<vmem>>, vector<1x128xf32>
        %c3 = arith.constant 3 : index
        %c0_30 = arith.constant 0 : index
        %69 = vector.load %arg6[%c3, %c0_30] : memref<4x128xf32, #tpu.memory_space<vmem>>, vector<1x128xf32>
        %c0_31 = arith.constant 0 : index
        %c0_32 = arith.constant 0 : index
        %70 = vector.load %arg11[%c0_31, %c0_32] : memref<2x128xf32, #tpu.memory_space<vmem>>, vector<2x128xf32>
        %c0_33 = arith.constant 0 : index
        %c0_34 = arith.constant 0 : index
        %71 = vector.load %arg5[%c0_33, %c0_34] : memref<128x128xf32, #tpu.memory_space<vmem>>, vector<128x128xf32>
        %cst_35 = arith.constant dense<0.000000e+00> : vector<2x128xf32>
        %72 = tpu.matmul %70, %71, %cst_35 {dimension_numbers = #tpu.dot_dimension_numbers<[1], [0], [0], [1], [0, 0, 1, 1], [], []>} : vector<2x128xf32>, vector<128x128xf32>, vector<2x128xf32> -> vector<2x128xf32>
        %73 = vector.extract_strided_slice %72 {offsets = [0, 0], sizes = [1, 128], strides = [1, 1]} : vector<2x128xf32> to vector<1x128xf32>
        %74 = vector.extract_strided_slice %72 {offsets = [1, 0], sizes = [1, 128], strides = [1, 1]} : vector<2x128xf32> to vector<1x128xf32>
        %75 = arith.mulf %73, %73 : vector<1x128xf32>
        %76 = arith.subf %74, %75 : vector<1x128xf32>
        %cst_36 = arith.constant 9.99999974E-6 : f32
        %77 = vector.broadcast %cst_36 : f32 to vector<1x128xf32>
        %78 = arith.addf %76, %77 : vector<1x128xf32>
        %79 = math.rsqrt %78 : vector<1x128xf32>
        %80 = arith.mulf %68, %79 : vector<1x128xf32>
        %81 = arith.mulf %73, %80 : vector<1x128xf32>
        %82 = arith.subf %69, %81 : vector<1x128xf32>
        %c0_37 = arith.constant 0 : index
        %c0_38 = arith.constant 0 : index
        %83 = vector.load %arg14[%c0_37, %c0_38] : memref<1x128xf32, #tpu.memory_space<vmem>>, vector<1x128xf32>
        tpu.vector_store %arg14[%c0_37, %c0_38], %80 {strides = array<i32>} : memref<1x128xf32, #tpu.memory_space<vmem>>, vector<1x128xf32>,
        %c0_39 = arith.constant 0 : index
        %c0_40 = arith.constant 0 : index
        %84 = vector.load %arg15[%c0_39, %c0_40] : memref<1x128xf32, #tpu.memory_space<vmem>>, vector<1x128xf32>
        tpu.vector_store %arg15[%c0_39, %c0_40], %82 {strides = array<i32>} : memref<1x128xf32, #tpu.memory_space<vmem>>, vector<1x128xf32>,
      } else {
      }
      %54 = arith.index_cast %arg1 : i32 to index
      %c0 = arith.constant 0 : index
      %c0_20 = arith.constant 0 : index
      %55 = vector.load %arg9[%54, %c0, %c0_20] : memref<2x128x128xf32, #tpu.memory_space<vmem>>, vector<1x128x128xf32>
      %56 = vector.shape_cast %55 : vector<1x128x128xf32> to vector<128x128xf32>
      %c0_21 = arith.constant 0 : index
      %c0_22 = arith.constant 0 : index
      %57 = vector.load %arg14[%c0_21, %c0_22] : memref<1x128xf32, #tpu.memory_space<vmem>>, vector<1x128xf32>
      %58 = vector.broadcast %57 : vector<1x128xf32> to vector<128x128xf32>
      %59 = arith.mulf %56, %58 : vector<128x128xf32>
      %c0_23 = arith.constant 0 : index
      %c0_24 = arith.constant 0 : index
      %60 = vector.load %arg15[%c0_23, %c0_24] : memref<1x128xf32, #tpu.memory_space<vmem>>, vector<1x128xf32>
      %61 = vector.broadcast %60 : vector<1x128xf32> to vector<128x128xf32>
      %62 = arith.addf %59, %61 : vector<128x128xf32>
      %c0_25 = arith.constant 0 : index
      %c0_26 = arith.constant 0 : index
      %63 = vector.load %arg2[%c0_25, %c0_26] : memref<128x128xf32, #tpu.memory_space<vmem>>, vector<128x128xf32>
      %64 = arith.addf %62, %63 : vector<128x128xf32>
      %cst = arith.constant 0.000000e+00 : f32
      %65 = vector.broadcast %cst : f32 to vector<128x128xf32>
      %66 = arith.maximumf %64, %65 : vector<128x128xf32>
      %c0_27 = arith.constant 0 : index
      %c0_28 = arith.constant 0 : index
      %67 = vector.load %arg7[%c0_27, %c0_28] : memref<128x128xf32, #tpu.memory_space<vmem>>, vector<128x128xf32>
      tpu.vector_store %arg7[%c0_27, %c0_28], %66 {strides = array<i32>} : memref<128x128xf32, #tpu.memory_space<vmem>>, vector<128x128xf32>,
    } else {
    }
    return
  }
  func.func @transform_0(%arg0: i32, %arg1: i32) -> (i32, i32) {
    %c1_i32 = arith.constant 1 : i32
    %0 = arith.cmpi eq, %arg0, %c1_i32 : i32
    %c1_i32_0 = arith.constant 1 : i32
    %1 = arith.select %0, %c1_i32_0, %arg1 : i32
    %c0_i32 = arith.constant 0 : i32
    %c0_i32_1 = arith.constant 0 : i32
    return %1, %c0_i32 : i32, i32
  }
  func.func @transform_1(%arg0: i32, %arg1: i32) -> (i32, i32, i32) {
    %c0_i32 = arith.constant 0 : i32
    %c0_i32_0 = arith.constant 0 : i32
    %c0_i32_1 = arith.constant 0 : i32
    %c0_i32_2 = arith.constant 0 : i32
    return %c0_i32, %c0_i32_0, %c0_i32_1 : i32, i32, i32
  }
  func.func @transform_2(%arg0: i32, %arg1: i32) -> (i32, i32, i32) {
    %c0_i32 = arith.constant 0 : i32
    %c0_i32_0 = arith.constant 0 : i32
    %c0_i32_1 = arith.constant 0 : i32
    %c0_i32_2 = arith.constant 0 : i32
    return %c0_i32, %c0_i32_0, %c0_i32_1 : i32, i32, i32
  }
  func.func @transform_3(%arg0: i32, %arg1: i32) -> (i32, i32) {
    %c0_i32 = arith.constant 0 : i32
    %c0_i32_0 = arith.constant 0 : i32
    %c0_i32_1 = arith.constant 0 : i32
    return %c0_i32, %c0_i32_0 : i32, i32
  }
  func.func @transform_4(%arg0: i32, %arg1: i32) -> (i32, i32) {
    %c0_i32 = arith.constant 0 : i32
    %c0_i32_0 = arith.constant 0 : i32
    %c0_i32_1 = arith.constant 0 : i32
    return %c0_i32, %c0_i32_0 : i32, i32
  }
  func.func @transform_5(%arg0: i32, %arg1: i32) -> (i32, i32) {
    %c2_i32 = arith.constant 2 : i32
    %0 = arith.cmpi eq, %arg0, %c2_i32 : i32
    %c0_i32 = arith.constant 0 : i32
    %1 = arith.select %0, %arg1, %c0_i32 : i32
    %c0_i32_0 = arith.constant 0 : i32
    %c0_i32_1 = arith.constant 0 : i32
    return %1, %c0_i32_0 : i32, i32
  }
}

</mosaic_0001>

<bundles_post_ra>
// kernel: tpu_custom_call.1
= control target key start
LH: loop header
LB: loop body
LE: loop exit
PB: predicated region body
PF: predicated region fallthrough
CT: control target
= control target key end

     0   :  { %s4971_s0 = inlined_call_operand.hbm [shape: f32[256,128], index: 0, kind: input, shape index: {}]   ;;  %s4972_s1 = inlined_call_operand.hbm [shape: bf16[3,128,128], index: 1, kind: input, shape index: {}]   ;;  %s4973_s2 = inlined_call_operand.hbm [shape: bf16[3,128,128], index: 2, kind: input, shape index: {}]   ;;  %s4974_s3 = inlined_call_operand.hbm [shape: f32[128,128], index: 3, kind: input, shape index: {}]   ;;  %s4975_s4 = inlined_call_operand.vmem [shape: f32[4,128], index: 4, kind: input, shape index: {}]   ;;  %s4976_s5 = inlined_call_operand.hbm [shape: f32[256,128], index: 5, kind: output, shape index: {}]  }
   0x1   :  { %5009 = sst [smem:[#allocation29_spill]] %s4972_s1 }
   0x2   :  { %5010 = sst [smem:[#allocation30_spill]] %s4973_s2 }
   0x3   :  { %5011 = sst [smem:[#allocation31_spill]] %s4974_s3 }
   0x4   :  { %5012 = sst [smem:[#allocation32_spill]] %s4975_s4 }
   0x5   :  { %5013 = sst [smem:[#allocation33_spill]] %s4976_s5 }
   0x6   :  { %10 = vsyncpa [#allocation11], 0 }
   0x7   :  { %12 = vsyncpa [#allocation11 + $0x1], 0 }
   0x8   :  { %13 = vsyncpa [#allocation14], 0 }
   0x9   :  { %14 = vsyncpa [#allocation17], 0 }
   0xa   :  { %15 = vsyncpa [#allocation12], 0 }
   0xb   :  { %17 = vsyncpa [#allocation12 + $0x1], 0  ;;  %s3803_s18 = smov 0   ;;  %s3805_s19 = smov 0  }
   0xc   :  { %s3807_s20 = smov 0   ;;  %s3809_s21 = smov 0  }
   0xd   :  { %s3811_s22 = smov 0   ;;  %s3813_s23 = smov 0  }
   0xe   :  { %s3815_s24 = smov 0   ;;  %s3817_s25 = smov 0  }
   0xf   :  { %s3819_s26 = smov 0   ;;  %s3821_s27 = smov 0  }
  0x10   :  { %s3823_s28 = smov 0  }
  0x11 LB: > { %5014 = sst [smem:[#allocation23_spill]] %s3713_s18  ;;  %s2686_s29 = sadd.s32 4294967295, %s3753_s28   ;;  %s3753_s28 = sphi %s3823_s28, %s23_s28   ;;  %s3749_s27 = sphi %s3821_s27, %s5144_s27   ;;  %s3745_s26 = sphi %s3819_s26, %s5151_s26   ;;  %s3741_s25 = sphi %s3817_s25, %s5143_s25   ;;  %s3737_s24 = sphi %s3815_s24, %s5142_s24   ;;  %s3733_s23 = sphi %s3813_s23, %s5150_s23   ;;  %s3729_s22 = sphi %s3811_s22, %s5149_s22   ;;  %s3725_s21 = sphi %s3809_s21, %s5148_s21   ;;  %s3721_s20 = sphi %s3807_s20, %s5147_s20   ;;  %s3717_s19 = sphi %s3805_s19, %s5146_s19   ;;  %s3713_s18 = sphi %s3803_s18, %s5145_s18  }
  0x12   : > { %5015 = sst [smem:[#allocation24_spill]] %s3745_s26  ;;  %s2687_s30 = sadd.s32 4294967294, %s3753_s28  }
  0x13   : > { %5016 = sst [smem:[#allocation25_spill]] %s3749_s27  ;;  %p59_p0 = scmp.ne.s32.totalorder %s3729_s22, %s3725_s21 }
  0x14   : > { %p3859_p1 = scmp.eq.s32.totalorder %s2686_s29, 0  ;;  %p170_p2 = scmp.ne.s32.totalorder %s3721_s20, %s3717_s19 }
  0x15   : > { %p171_p4 = scmp.eq.s32.totalorder %s2686_s29, 5  ;;  %p176_p5 = scmp.ne.s32.totalorder %s3717_s19, %s3713_s18 }
  0x16   : > { %s5017_s6 = scalar_select %p3859_p1, 1, 0 }
  0x17   : > { %p3868_p3 = por %p3859_p1, %p59_p0  ;;  %p177_p6 = scmp.eq.s32.totalorder %s2687_s30, 5 }
  0x18   : > { %p3874_p7 = por %p171_p4, %p170_p2  ;;  %p2688_p8 = scmp.ge.s32.totalorder %s3753_s28, 1 }
  0x19   : > { %s5018_s8 = scalar_select %p3868_p3, 1, 0 }
  0x1a   : > { %s5019_s9 = scalar_select %p3874_p7, 1, 0 }
  0x1b   : > { %p3879_p9 = por %p177_p6, %p176_p5  ;;  %p184_p10 = scmp.lt.s32.totalorder %s3753_s28, 7 }
  0x1c   : > { %5020 = sst [smem:[#allocation26_spill]] %s5019_s9  ;;  %s3755_s12 = smov [#allocation13]  }
  0x1d   : > { %s5021_s10 = scalar_select %p3879_p9, 1, 0 }
  0x1e   : > { %p3884_p11 = pnand %p2688_p8, %p184_p10  ;;  %s196_s13 = sshll.u32 %s3755_s12, 4  ;;  %s197_s13 = int_to_ptr.vmem [resolvable:$true] %s196_s13 }
  0x1f   : > { %5022 = sst [smem:[#allocation27_spill]] %s5021_s10  ;;  %s3756_s15 = smov [#allocation15]  }
  0x20   : > { %p3337_p12 = pneg %p3884_p11  ;;  %s209_s16 = sshll.u32 %s3756_s15, 4  ;;  %s210_s16 = int_to_ptr.vmem [resolvable:$true] %s209_s16 }
  0x21   : > { %s3757_s17 = smov [#allocation16]   ;;  %s3530_s29 = scalar_lea.vmem %s197_s13, 3072 }
  0x22   : > { %p3892_p13 = pnand %p3337_p12, %p3859_p1  ;;  %s222_s21 = sshll.u32 %s3757_s17, 4  ;;  %s223_s21 = int_to_ptr.vmem [resolvable:$true] %s222_s21 }
  0x23   : > { %p3531_p2 = scmp.ne.s32.totalorder %s197_s13, %s3530_s29  ;;  %p3538_p6 = scmp.lt.s32.totalorder %s197_s13, %s197_s13 }
  0x24   : > { %p3521_p0 = pneg %p3892_p13  ;;  %p3539_p8 = scmp.lt.s32.totalorder %s3530_s29, %s3530_s29 }
  0x26   : > { %p3533_p4 = pnand %p3531_p2, %p3521_p0  ;;  %p3540_p10 = por %p3539_p8, %p3538_p6 }
  0x28   : > { %p3534_p5 = pneg %p3533_p4 }
  0x2a   : > { %p3541_p12 = pnand %p3540_p10, %p3534_p5 }
  0x2c   : > { %3544 = shalt.err (!%p3541_p12)
}
  0x2d   : > { %s3758_s30 = smov 64   ;;  %s3759_s12 = smov 4  }
  0x2e   : > { %s5025_s1 = sld [smem:[#allocation29_spill]]  ;;  %s3556_s7 = scalar_lea.vmem %s210_s16, 3072 }
  0x2f   : > { %p3557_p9 = scmp.ne.s32.totalorder %s210_s16, %s3556_s7  ;;  %p3564_p7 = scmp.lt.s32.totalorder %s210_s16, %s210_s16 }
  0x30   : > { %p3565_p1 = scmp.lt.s32.totalorder %s3556_s7, %s3556_s7 }
  0x31   : > { %p3559_p2 = pnand %p3557_p9, %p3521_p0 }
  0x32   : > { %p3566_p6 = por %p3565_p1, %p3564_p7 }
  0x33   : > { %p3560_p4 = pneg %p3559_p2 }
  0x34   : > { %3340 = dma.hbm_to_vmem [thread:$0]  (!%p3892_p13), %s5025_s1, 3072, %s197_s13, [#allocation14], %s3758_s30, %s3758_s30, %s3759_s12  }
  0x35   : > { %p3567_p5 = pnand %p3566_p6, %p3560_p4 }
  0x37   : > { %3570 = shalt.err (!%p3567_p5)
}
  0x38   : > { %s5026_s2 = sld [smem:[#allocation30_spill]]  ;;  %s3582_s13 = scalar_lea.vmem %s223_s21, 2048 }
  0x39   : > { %p3583_p8 = scmp.ne.s32.totalorder %s223_s21, %s3582_s13  ;;  %p3590_p12 = scmp.lt.s32.totalorder %s223_s21, %s223_s21 }
  0x3a   : > { %p3591_p2 = scmp.lt.s32.totalorder %s3582_s13, %s3582_s13 }
  0x3b   : > { %p3585_p10 = pnand %p3583_p8, %p3521_p0 }
  0x3c   : > { %p3592_p3 = por %p3591_p2, %p3590_p12 }
  0x3d   : > { %p3586_p9 = pneg %p3585_p10 }
  0x3e   : > { %3343 = dma.hbm_to_vmem [thread:$0]  (!%p3892_p13), %s5026_s2, 3072, %s210_s16, [#allocation14], %s3758_s30, %s3758_s30, %s3759_s12  }
  0x3f   : > { %p3593_p1 = pnand %p3592_p3, %p3586_p9 }
  0x41   : > { %3596 = shalt.err (!%p3593_p1)
}
  0x42   : > { %s4982_s7 = smov 128   ;;  %s4983_s10 = smov 8  }
  0x43   : > { %s5027_s3 = sld [smem:[#allocation31_spill]]  ;;  %s32_s12 = sadd.s32 1, %s3745_s26 }
  0x44   : > { %p33_p3 = scmp.ge.s32.totalorder %s32_s12, 2  ;;  %s35_s15 = sadd.s32 1, %s3749_s27 }
  0x45   : > { %p39_p7 = scmp.eq.s32.totalorder %s3749_s27, 1  ;;  %s46_s17 = sadd.s32 1, %s3733_s23 }
  0x46   : > { %s5153_s12 = smov (%p33_p3, %s32_s12), 0  ;;  %s5155_s15 = smov (!%p33_p3, %s35_s15), %s3749_s27 }
  0x47   : > { %s40_s14 = scalar_select %p39_p7, 1, %s3745_s26 }
  0x48   : > { %p37_p0 = scmp.ge.s32.totalorder %s5155_s15, 3  ;;  %p53_p4 = scmp.ne.s32.totalorder %s3733_s23, %s3729_s22 }
  0x49   : > { %3346 = dma.hbm_to_vmem [thread:$0]  (!%p3892_p13), %s5027_s3, 2048, %s223_s21, [#allocation17], %s4982_s7, %s4982_s7, %s4983_s10  }
  0x4a   : > { %p54_p6 = scmp.eq.s32.totalorder %s3753_s28, 0  ;;  %p153_p13 = scmp.eq.s32.totalorder %s3749_s27, 2 }
  0x4b   : > { %s5157_s15 = smov (%p37_p0, %s5155_s15), 0  ;;  %p3358_p8 = scmp.lt.s32.totalorder %s3753_s28, 6 }
  0x4c   : > { %5028 = sst [smem:[#allocation28_spill]] %s5157_s15  ;;  %p3939_p5 = por %p54_p6, %p53_p4 }
  0x4d   : > { %p41_p10 = scmp.eq.s32.totalorder %s5157_s15, 1  ;;  %p155_p9 = scmp.eq.s32.totalorder %s5157_s15, 2 }
  0x4e   : > { %s154_s29 = scalar_select %p153_p13, %s3745_s26, 0 }
  0x4f   : > { %s42_s13 = scalar_select %p41_p10, 1, %s5153_s12 }
  0x50   : > { %s156_s16 = scalar_select %p155_p9, %s5153_s12, 0 }
  0x51   : > { %s43_s30 = ssub.s32 %s40_s14, %s42_s13  ;;  %s239_s7 = sand.u32 1, %s3733_s23  }
  0x52   : > { %p44_p12 = scmp.eq.s32.totalorder %s43_s30, 0  ;;  %s157_s10 = ssub.s32 %s154_s29, %s156_s16 }
  0x53   : > { %p158_p2 = scmp.eq.s32.totalorder %s157_s10, 0  ;;  %s5030_s2 = sadd.s32 1, %s3721_s20 }
  0x54   : > { %s3951_s1 = scalar_select %p44_p12, %s3733_s23, %s46_s17  }
  0x55   : > { %s3956_s3 = scalar_select %p158_p2, %s3721_s20, %s5030_s2  }
  0x56   : > { %s2693_s27 = sshll.u32 %s239_s7, 7  ;;  %s2895_s18 = sshll.u32 %s40_s14, 11 }
  0x57   : > { %s251_s15 = scalar_lea.hbm %s4971_s0, %s2895_s18  ;;  %s243_s4 = scalar_lea.vmem [#allocation10], %s2693_s27 }
  0x58   : > { %s252_s26 = sshll.u32 %s243_s4, 4  ;;  %p3965_p1 = pnand %p3358_p8, %p3939_p5  ;;  %s253_s26 = int_to_ptr.vmem [resolvable:$true] %s252_s26 }
  0x59   : > { %s240_s10 = scalar_lea.sflag [#allocation11], %s239_s7  ;;  %s3610_s2 = scalar_lea.vmem %s253_s26, 2048 }
  0x5a   : > { %p3599_p3 = pneg %p3965_p1  ;;  %p3611_p7 = scmp.ne.s32.totalorder %s253_s26, %s3610_s2 }
  0x5b   : > { %s3762_s17 = smov [#allocation10]  }
  0x5c   : > { %p3613_p0 = pnand %p3611_p7, %p3599_p3  ;;  %s3615_s5 = sshll.u32 %s3762_s17, 4  ;;  %s3616_s5 = int_to_ptr.vmem [resolvable:$false] %s3615_s5 }
  0x5d   : > { %s3617_s18 = scalar_lea.vmem %s3616_s5, 4096  ;;  %p3618_p6 = scmp.lt.s32.totalorder %s253_s26, %s3616_s5 }
  0x5e   : > { %p3614_p4 = pneg %p3613_p0  ;;  %p3619_p13 = scmp.lt.s32.totalorder %s3617_s18, %s3610_s2 }
  0x60   : > { %p3620_p10 = por %p3619_p13, %p3618_p6 }
  0x62   : > { %p3621_p5 = pnand %p3620_p10, %p3614_p4 }
  0x64   : > { %3624 = shalt.err (!%p3621_p5)
}
  0x65   : > { %s5032_s4 = smov 8   ;;  %s5033_s27 = smov 128  }
  0x66   : > { %3350 = dma.hbm_to_vmem [thread:$0]  (!%p3965_p1), %s251_s15, 2048, %s253_s26, %s240_s10, %s5033_s27, %s5033_s27, %s5032_s4  }
  0x67   : > { %264 = sbr.rel (%p3884_p11) target bundleno = 1364 (0x554), region = 40  ;;  %s266_s9 = sand.u32 (!%p3884_p11), 1, %s3729_s22  }
  0x68   : > { %s2697_s7 = sshll.u32 (!%p3884_p11), %s266_s9, 7  ;;  %s267_s14 = scalar_lea.sflag (!%p3884_p11), [#allocation11], %s266_s9 }
  0x69   : > { %s3979_s21 = scalar_lea.vmem (!%p3884_p11), [#allocation10], %s2697_s7  ;;  %p5034_p8 = scmp.ne.s32.totalorder (!%p3884_p11), %s5018_s8, 0 }
  0x6c   : > { %3696 = dma.done.wait (%p5034_p8), %s267_s14, 2048  }
  0x6d   : > { %3698 = vsyncadd (%p5034_p8), %s267_s14, 4294965248  ;;  %p5035_p9 = scmp.ne.s32.totalorder %s5017_s6, 0 }
  0x6f   : > { %3700 = dma.done.wait (%p5035_p9), [#allocation14], 6144  }
  0x70   : > { %3702 = vsyncadd (%p5035_p9), [#allocation14], 4294961152 }
  0x71   : > { %3704 = dma.done.wait (%p5035_p9), [#allocation17], 2048  }
  0x72   : > { %3706 = vsyncadd (%p5035_p9), [#allocation17], 4294965248  ;;  %s306_s26 = sand.u32 1, %s3717_s19   ;;  %v316_v0 = vlaneseq  ;;  %p557_p11 = scmp.eq.s32.totalorder %s3741_s25, 0  ;;  %v5037_v33 = vmov 0  ;;  %v5039_v34 = vmov 0 }
  0x73   : > { %s3997_s8 = sshll.u32 %s306_s26, 7  ;;  %p558_p12 = scmp.eq.s32.totalorder %s3737_s24, 0  ;;  %v5041_v35 = vmov 0  ;;  %v5051_v40 = vmov 0  ;;  %v5053_v41 = vmov 0  ;;  %v5055_v42 = vmov 0 }
  0x74   : > { %v4000_v1 = vshrl.u32 %v316_v0, 7  ;;  %v5057_v43 = vmov 0  ;;  %v5059_v44 = vmov 0  ;;  %v5061_v45 = vmov 0  ;;  %s4087_s6 = scalar_lea.vmem [#allocation18], %s3997_s8 }
  0x75   : > { %p4002_p2 = pnand %p558_p12, %p557_p11  ;;  %v5065_v47 = vmov 0  ;;  %v5067_v48 = vmov 0 }
  0x76   : > { %v318_v2 = vadd.s32 8, %v4000_v1  ;;  %v319_v3 = vadd.s32 16, %v4000_v1  ;;  %v320_v4 = vadd.s32 24, %v4000_v1  ;;  %v321_v5 = vadd.s32 32, %v4000_v1 }
  0x77   : > { %v322_v6 = vadd.s32 40, %v4000_v1  ;;  %v323_v7 = vadd.s32 48, %v4000_v1  ;;  %v324_v8 = vadd.s32 56, %v4000_v1  ;;  %v325_v9 = vadd.s32 64, %v4000_v1 }
  0x78   : > { %v326_v10 = vadd.s32 72, %v4000_v1  ;;  %v327_v11 = vadd.s32 80, %v4000_v1  ;;  %v328_v12 = vadd.s32 88, %v4000_v1  ;;  %v329_v13 = vadd.s32 96, %v4000_v1 }
  0x79   : > { %v330_v14 = vadd.s32 104, %v4000_v1  ;;  %v331_v15 = vadd.s32 112, %v4000_v1  ;;  %v332_v16 = vadd.s32 120, %v4000_v1  ;;  %v337_v17 = vand.u32 15, %v4000_v1 }
  0x7a   : > { %v344_v18 = vand.u32 15, %v318_v2  ;;  %v351_v19 = vand.u32 15, %v319_v3  ;;  %v358_v20 = vand.u32 15, %v320_v4  ;;  %v365_v21 = vand.u32 15, %v321_v5 }
  0x7b   : > { %v372_v22 = vand.u32 15, %v322_v6  ;;  %v379_v23 = vand.u32 15, %v323_v7  ;;  %v386_v24 = vand.u32 15, %v324_v8  ;;  %v393_v25 = vand.u32 15, %v325_v9 }
  0x7c   : > { %v400_v26 = vand.u32 15, %v326_v10  ;;  %v407_v27 = vand.u32 15, %v327_v11  ;;  %v414_v28 = vand.u32 15, %v328_v12  ;;  %v421_v29 = vand.u32 15, %v329_v13 }
  0x7d   : > { %v428_v30 = vand.u32 15, %v330_v14  ;;  %v435_v31 = vand.u32 15, %v331_v15  ;;  %v442_v32 = vand.u32 15, %v332_v16  ;;  %vm4022_vm0 = vcmp.eq.s32.totalorder %v337_v17, 0 }
  0x7e   : > { %v5038_v33 = vsel %vm4022_vm0, 4294967295, %v5037_v33  ;;  %vm4026_vm1 = vcmp.eq.s32.totalorder %v351_v19, 0  ;;  %vm4030_vm2 = vcmp.eq.s32.totalorder %v365_v21, 0  ;;  %vm4034_vm3 = vcmp.eq.s32.totalorder %v379_v23, 0 }
  0x7f   : > { %v5040_v34 = vsel %vm4026_vm1, 4294967295, %v5039_v34  ;;  %v5042_v35 = vsel %vm4030_vm2, 4294967295, %v5041_v35  ;;  %vm4038_vm4 = vcmp.eq.s32.totalorder %v393_v25, 0  ;;  %vm4042_vm5 = vcmp.eq.s32.totalorder %v407_v27, 0 }
  0x80   : > { %vm4046_vm6 = vcmp.eq.s32.totalorder %v421_v29, 0  ;;  %vm4050_vm7 = vcmp.eq.s32.totalorder %v435_v31, 0  ;;  %vm4054_vm8 = vcmp.eq.s32.totalorder %v344_v18, 15  ;;  %vm4058_vm9 = vcmp.eq.s32.totalorder %v358_v20, 15  ;;  %562 = sbr.rel (%p4002_p2) target bundleno = 135 (0x87), region = 60 }
  0x81   : > { %v5052_v40 = vsel %vm4050_vm7, 4294967295, %v5051_v40  ;;  %v5054_v41 = vsel %vm4054_vm8, 4294967295, %v5053_v41  ;;  %v5056_v42 = vsel %vm4058_vm9, 4294967295, %v5055_v42  ;;  %vm4062_vm10 = vcmp.eq.s32.totalorder %v372_v22, 15 }
  0x82   : > { %v5058_v43 = vsel %vm4062_vm10, 4294967295, %v5057_v43  ;;  %vm4066_vm11 = vcmp.eq.s32.totalorder %v386_v24, 15  ;;  %vm4070_vm12 = vcmp.eq.s32.totalorder %v400_v26, 15  ;;  %vm4074_vm13 = vcmp.eq.s32.totalorder %v414_v28, 15 }
  0x83   : > { %v5060_v44 = vsel %vm4066_vm11, 4294967295, %v5059_v44  ;;  %v5062_v45 = vsel %vm4070_vm12, 4294967295, %v5061_v45  ;;  %vm4078_vm14 = vcmp.eq.s32.totalorder %v428_v30, 15  ;;  %vm4082_vm15 = vcmp.eq.s32.totalorder %v442_v32, 15 }
  0x84   : > { %v5066_v47 = vsel %vm4078_vm14, 4294967295, %v5065_v47  ;;  %v5068_v48 = vsel %vm4082_vm15, 4294967295, %v5067_v48 }
  0x85   : > { %v3763_v49 = vmov 0.0  }
  0x86   : > { %563 = vst [vmem:[#allocation4] sm:$0x3] %v3763_v49  ;;  %564 = vst [vmem:[#allocation5] sm:$0x3] %v3763_v49 }
  0x87 PF: > { %p2702_p1 = scmp.ne.s32.totalorder %s3741_s25, 0 }
  0x88   : > { %s2791_s15 = sshll.u32 (!%p2702_p1), %s3737_s24, 7 }
  0x89   : > { %567 = sbr.rel (%p2702_p1) target bundleno = 460 (0x1cc), region = 64  ;;  %s4376_s29 = scalar_lea.vmem (!%p2702_p1), [#allocation2], %s2791_s15 }
  0x8e   : > { %v3467_v50 = vld [vmem:[#allocation13 + $0x78] sm:$0xff]   ;;  %v3469_v52 = vld [vmem:[#allocation13 + $0x70] sm:$0xff]   ;;  %v3471_v54 = vld [vmem:[#allocation13 + $0x68] sm:$0xff]   ;;  %vm4999_vm15 = vcmp.lt.s32.totalorder %v4000_v1, 1 }
  0x8f   : > { %v3468_v51 = vld [vmem:[#allocation13 + $0x38] sm:$0xff]   ;;  %3027 = vmatprep.subr.bf16.mxu0 %v3467_v50  ;;  %v3470_v53 = vld [vmem:[#allocation13 + $0x30] sm:$0xff]   ;;  %v3472_v55 = vld [vmem:[#allocation13 + $0x28] sm:$0xff]  }
  0x90   : > { %3059 = vmatprep.subr.bf16.mxu1 %v3468_v51  ;;  %3028 = vmatpush3.bf16.msra.mxu0 %v3467_v50  ;;  %v3473_v56 = vld [vmem:[#allocation13 + $0x60] sm:$0xff]   ;;  %v3475_v58 = vld [vmem:[#allocation13 + $0x58] sm:$0xff]   ;;  %v3477_v60 = vld [vmem:[#allocation13 + $0x50] sm:$0xff]  }
  0x91   : > { %3060 = vmatpush3.bf16.msra.mxu1 %v3468_v51  ;;  %3029 = vmatprep.subr.bf16.mxu0 %v3469_v52  ;;  %v3474_v57 = vld [vmem:[#allocation13 + $0x20] sm:$0xff]   ;;  %v3476_v59 = vld [vmem:[#allocation13 + $0x18] sm:$0xff]   ;;  %v4096_v62 = vld [vmem:[%s3979_s21 + $0x8] sm:$0xff] }
  0x92   : > { %3061 = vmatprep.subr.bf16.mxu1 %v3470_v53  ;;  %v4093_v61 = vld [vmem:[%s3979_s21] sm:$0xff]  ;;  %v4099_v63 = vld [vmem:[%s3979_s21 + $0x78] sm:$0xff]  ;;  %v3478_v0 = vld [vmem:[#allocation13 + $0x10] sm:$0xff]   ;;  %v585_v3 = vrot.slane %v4096_v62, 7 }
  0x93   : > { %v584_v2 = vrot.slane %v4093_v61, 7  ;;  %vm2719_vm11 = vmneg %vm4022_vm0  ;;  %v770_v4 = vpack.c.bf16 %v4096_v62, %v4093_v61  ;;  %v599_v5 = vrot.slane %v4099_v63, 7  ;;  %v3479_v6 = vld [vmem:[#allocation13 + $0x48] sm:$0xff]   ;;  %v4112_v8 = vld [vmem:[%s3979_s21 + $0x10] sm:$0xff]  ;;  %vm5000_vm0 = vmmov 1  }
  0x94   : > { %3030 = vmatpush3.bf16.msra.mxu0 %v3469_v52  ;;  %vm2720_vm14 = vmpackc.low %vm5000_vm0, %vm2719_vm11  ;;  %v3480_v10 = vld [vmem:[#allocation13 + $0x8] sm:$0xff]   ;;  %v4120_v12 = vld [vmem:[%s3979_s21 + $0x18] sm:$0xff]  ;;  %v586_v14 = vrot.slane %v4112_v8, 7 }
  0x95   : > { %3062 = vmatpush3.bf16.msra.mxu1 %v3470_v53  ;;  %3031 = vmatprep.subr.bf16.mxu0 %v3471_v54  ;;  %v615_v7 = vsel %vm4999_vm15, %v584_v2, %v585_v3  ;;  %v616_v9 = vsel %vm4999_vm15, %v599_v5, %v584_v2  ;;  %v3481_v13 = vld [vmem:[#allocation13 + $0x40] sm:$0xff]   ;;  %v587_v16 = vrot.slane %v4120_v12, 7  ;;  %v4128_v17 = vld [vmem:[%s3979_s21 + $0x28] sm:$0xff]  ;;  %vm2723_vm11 = vmneg %vm4026_vm1  ;;  %v771_v26 = vpack.c.bf16 %v4120_v12, %v4112_v8 }
  0x96   : > { %3063 = vmatprep.subr.bf16.mxu1 %v3472_v55  ;;  %3043 = vmatprep.mubr.bf16.mxu0 %v770_v4  ;;  %v2721_v11 = vpack.c.bf16 %v615_v7, %v616_v9  ;;  %v4124_v15 = vld [vmem:[%s3979_s21 + $0x20] sm:$0xff]  ;;  %v589_v20 = vrot.slane %v4128_v17, 7  ;;  %v614_v22 = vsel %vm4999_vm15, %v585_v3, %v586_v14  ;;  %v3483_v23 = vld [vmem:[#allocation13 + $0xb8] sm:$0xff]   ;;  %v4139_v24 = vld [vmem:[%s3979_s21 + $0x30] sm:$0xff] }
  0x97   : > { %v3482_v18 = vld [vmem:[#allocation13] sm:$0xff]   ;;  %v588_v19 = vrot.slane %v4124_v15, 7  ;;  %v613_v21 = vsel %vm4999_vm15, %v586_v14, %v587_v16  ;;  %v4142_v25 = vld [vmem:[%s3979_s21 + $0x38] sm:$0xff]  ;;  %v3484_v29 = vld [vmem:[#allocation13 + $0xb0] sm:$0xff]   ;;  %v590_v32 = vrot.slane %v4139_v24, 7  ;;  %v772_v52 = vpack.c.bf16 %v4128_v17, %v4124_v15 }
  0x98   : > { %3032 = vmatpush3.bf16.msra.mxu0 %v3471_v54  ;;  %3075 = vmatprep.mubr.msk.bf16.mxu1 %vm2720_vm14, %v2721_v11  ;;  %vm4147_vm14 = vmpackc.low %vm5000_vm0, %vm2723_vm11  ;;  %v2725_v28 = vpack.c.bf16 %v613_v21, %v614_v22  ;;  %v591_v49 = vrot.slane %v4142_v25, 7  ;;  %v4160_v50 = vld [vmem:[%s3979_s21 + $0x40] sm:$0xff]  ;;  %v4163_v51 = vld [vmem:[%s3979_s21 + $0x48] sm:$0xff]  ;;  %v669_v2 = vrot.slane %v4124_v15, 1 }
  0x99   : > { %3064 = vmatpush3.bf16.msra.mxu1 %v3472_v55  ;;  %3033 = vmatprep.subr.bf16.mxu0 %v3473_v56  ;;  %v611_v30 = vsel %vm4999_vm15, %v588_v19, %v589_v20  ;;  %v612_v31 = vsel %vm4999_vm15, %v587_v16, %v588_v19  ;;  %vm2727_vm1 = vmneg %vm4030_vm2  ;;  %v592_v54 = vrot.slane %v4160_v50, 7  ;;  %v593_v55 = vrot.slane %v4163_v51, 7  ;;  %v3486_v4 = vld [vmem:[#allocation13 + $0xa0] sm:$0xff]   ;;  %v3487_v22 = vld [vmem:[#allocation13 + $0x98] sm:$0xff]  }
  0x9a   : > { %3065 = vmatprep.subr.bf16.mxu1 %v3474_v57  ;;  %v2729_v53 = vpack.c.bf16 %v611_v30, %v612_v31  ;;  %vm2728_vm11 = vmpackc.low %vm5000_vm0, %vm2727_vm1  ;;  %v4200_v11 = vld [vmem:[%s3979_s21 + $0x60] sm:$0xff]  ;;  %v774_v14 = vpack.c.bf16 %v4163_v51, %v4160_v50  ;;  %v3488_v31 = vld [vmem:[#allocation13 + $0x90] sm:$0xff]  }
  0x9b   : > { %vm2731_vm2 = vmneg %vm4034_vm3  ;;  %v608_v7 = vsel %vm4999_vm15, %v591_v49, %v592_v54 }
  0x9c   : > { %3034 = vmatpush3.bf16.msra.mxu0 %v3473_v56  ;;  %v609_v56 = vsel %vm4999_vm15, %v590_v32, %v591_v49  ;;  %vm4187_vm1 = vmpackc.low %vm5000_vm0, %vm2731_vm2 }
  0x9d   : > { %3066 = vmatpush3.bf16.msra.mxu1 %v3474_v57  ;;  %3035 = vmatprep.subr.bf16.mxu0 %v3475_v58  ;;  %v610_v57 = vsel %vm4999_vm15, %v589_v20, %v590_v32 }
  0x9e   : > { %3067 = vmatprep.subr.bf16.mxu1 %v3476_v59  ;;  %v2733_v3 = vpack.c.bf16 %v609_v56, %v610_v57  ;;  %v673_v56 = vrot.slane %v4160_v50, 1  ;;  %v674_v57 = vrot.slane %v4163_v51, 1  ;;  %v3489_v51 = vld [vmem:[#allocation13 + $0x88] sm:$0xff]  }
  0xa0   : > { %3036 = vmatpush3.bf16.msra.mxu0 %v3475_v58  ;;  %v3485_v58 = vld [vmem:[#allocation13 + $0xa8] sm:$0xff]  }
  0xa1   : > { %3068 = vmatpush3.bf16.msra.mxu1 %v3476_v59  ;;  %3037 = vmatprep.subr.bf16.mxu0 %v3477_v60  ;;  %v4179_v59 = vld [vmem:[%s3979_s21 + $0x50] sm:$0xff] }
  0xa2   : > { %3069 = vmatprep.subr.bf16.mxu1 %v3478_v0  ;;  %v594_v9 = vrot.slane %v4179_v59, 7 }
  0xa4   : > { %3038 = vmatpush3.bf16.msra.mxu0 %v3477_v60  ;;  %v4182_v60 = vld [vmem:[%s3979_s21 + $0x58] sm:$0xff]  ;;  %v606_v21 = vsel %vm4999_vm15, %v593_v55, %v594_v9 }
  0xa5   : > { %3070 = vmatpush3.bf16.msra.mxu1 %v3478_v0  ;;  %3039 = vmatprep.subr.bf16.mxu0 %v3479_v6  ;;  %v773_v0 = vpack.c.bf16 %v4142_v25, %v4139_v24 }
  0xa6   : > { %3071 = vmatprep.subr.bf16.mxu1 %v3480_v10 }
  0xa8   : > { %3040 = vmatpush3.bf16.msra.mxu0 %v3479_v6  ;;  %v607_v6 = vsel %vm4999_vm15, %v592_v54, %v593_v55  ;;  %v667_v54 = vrot.slane %v4112_v8, 1 }
  0xa9   : > { %3072 = vmatpush3.bf16.msra.mxu1 %v3480_v10  ;;  %3041 = vmatprep.subr.bf16.mxu0 %v3481_v13  ;;  %v595_v10 = vrot.slane %v4182_v60, 7  ;;  %v2737_v16 = vpack.c.bf16 %v607_v6, %v608_v7 }
  0xaa   : > { %3073 = vmatprep.subr.bf16.mxu1 %v3482_v18 }
  0xab   : > { %v605_v20 = vsel %vm4999_vm15, %v594_v9, %v595_v10  ;;  %v670_v9 = vrot.slane %v4128_v17, 1 }
  0xac   : > { %3042 = vmatpush3.bf16.msra.mxu0 %v3481_v13  ;;  %v4203_v13 = vld [vmem:[%s3979_s21 + $0x68] sm:$0xff] }
  0xad   : > { %3074 = vmatpush3.bf16.msra.mxu1 %v3482_v18  ;;  %3091 = vmatprep.subr.bf16.mxu0 %v3483_v23  ;;  %v596_v18 = vrot.slane %v4200_v11, 7  ;;  %v597_v19 = vrot.slane %v4203_v13, 7  ;;  %v776_v49 = vpack.c.bf16 %v4203_v13, %v4200_v11 }
  0xae   : > { %3289 = vmatprep.subr.bf16.mxu1 %v3483_v23 }
  0xaf   : > { %3044 = vmatmul.mubr.bf16.vlgmr.msra.gmra.mxu0 %v771_v26  ;;  %v775_v26 = vpack.c.bf16 %v4182_v60, %v4179_v59  ;;  %v604_v30 = vsel %vm4999_vm15, %v595_v10, %v596_v18  ;;  %v671_v10 = vrot.slane %v4139_v24, 1 }
  0xb0   : > { %3076 = vmatmul.mubr.msk.bf16.vlgmr.msra.gmra.mxu1 %vm4147_vm14, %v2725_v28  ;;  %3092 = vmatpush3.bf16.msra.mxu0 %v3483_v23  ;;  %vm2735_vm14 = vmneg %vm4038_vm4  ;;  %v2741_v28 = vpack.c.bf16 %v605_v20, %v606_v21 }
  0xb1   : > { %3297 = vmatpush3.bf16.msra.mxu1 %v3483_v23  ;;  %3093 = vmatprep.subr.bf16.mxu0 %v3484_v29  ;;  %vm2736_vm2 = vmpackc.low %vm5000_vm0, %vm2735_vm14  ;;  %v4219_v23 = vld [vmem:[%s3979_s21 + $0x70] sm:$0xff] }
  0xb2   : > { %3290 = vmatprep.subr.bf16.mxu1 %v3484_v29  ;;  %3047 = vmatprep.mubr.bf16.mxu0 %v772_v52  ;;  %vm2743_vm14 = vmneg %vm4046_vm6  ;;  %v598_v32 = vrot.slane %v4219_v23, 7  ;;  %v665_v52 = vrot.slane %v4093_v61, 1 }
  0xb3   : > { %3079 = vmatprep.mubr.msk.bf16.mxu1 %vm2728_vm11, %v2729_v53  ;;  %vm2739_vm11 = vmneg %vm4042_vm5  ;;  %v666_v53 = vrot.slane %v4096_v62, 1 }
  0xb4   : > { %3094 = vmatpush3.bf16.msra.mxu0 %v3484_v29 }
  0xb5   : > { %3298 = vmatpush3.bf16.msra.mxu1 %v3484_v29  ;;  %3095 = vmatprep.subr.bf16.mxu0 %v3485_v58  ;;  %v603_v29 = vsel %vm4999_vm15, %v596_v18, %v597_v19  ;;  %vm2744_vm15 = vmpackc.low %vm5000_vm0, %vm2743_vm14  ;;  %v679_v18 = vrot.slane %v4219_v23, 1 }
  0xb6   : > { %3291 = vmatprep.subr.bf16.mxu1 %v3485_v58  ;;  %v2745_v55 = vpack.c.bf16 %v603_v29, %v604_v30 }
  0xb7   : > { %3048 = vmatmul.mubr.bf16.gmra.mxu0 %v773_v0 }
  0xb8   : > { %3080 = vmatmul.mubr.msk.bf16.gmra.mxu1 %vm4187_vm1, %v2733_v3  ;;  %3096 = vmatpush3.bf16.msra.mxu0 %v3485_v58  ;;  %vm4224_vm1 = vmpackc.low %vm5000_vm0, %vm2739_vm11  ;;  %vm5075_vm11 = vcmp.lt.s32.totalorder %v4000_v1, 1 }
  0xb9   : > { %3299 = vmatpush3.bf16.msra.mxu1 %v3485_v58  ;;  %3097 = vmatprep.subr.bf16.mxu0 %v3486_v4  ;;  %v675_v58 = vrot.slane %v4179_v59, 1  ;;  %v601_v62 = vsel %vm5075_vm11, %v598_v32, %v599_v5  ;;  %v668_v59 = vrot.slane %v4120_v12, 1  ;;  %v777_v5 = vpack.c.bf16 %v4099_v63, %v4219_v23 }
  0xba   : > { %3292 = vmatprep.subr.bf16.mxu1 %v3486_v4  ;;  %3051 = vmatprep.mubr.bf16.mxu0 %v774_v14  ;;  %v3490_v14 = vld [vmem:[#allocation13 + $0x80] sm:$0xff]  }
  0xbb   : > { %3083 = vmatprep.mubr.msk.bf16.mxu1 %vm2736_vm2, %v2737_v16  ;;  %vm5076_vm2 = vmmov %vm5075_vm11  ;;  %v678_v16 = vrot.slane %v4203_v13, 1 }
  0xbc   : > { %3098 = vmatpush3.bf16.msra.mxu0 %v3486_v4  ;;  %v602_v8 = vsel %vm5076_vm2, %v597_v19, %v598_v32  ;;  %vm5080_vm2 = vcmp.lt.s32.totalorder %v4000_v1, 7 }
  0xbd   : > { %3300 = vmatpush3.bf16.msra.mxu1 %v3486_v4  ;;  %3099 = vmatprep.subr.bf16.mxu0 %v3487_v22  ;;  %v695_v3 = vsel %vm5080_vm2, %v666_v53, %v667_v54  ;;  %vm5081_vm11 = vmmov %vm5080_vm2  ;;  %v676_v4 = vrot.slane %v4182_v60, 1  ;;  %v2749_v6 = vpack.c.bf16 %v601_v62, %v602_v8  ;;  %v677_v60 = vrot.slane %v4200_v11, 1 }
  0xbe   : > { %3293 = vmatprep.subr.bf16.mxu1 %v3487_v22  ;;  %v696_v12 = vsel %vm5081_vm11, %v665_v52, %v666_v53  ;;  %vm2763_vm11 = vmneg %vm4058_vm9  ;;  %vm5089_vm9 = vcmp.lt.s32.totalorder %v4000_v1, 7  ;;  %v680_v53 = vrot.slane %v4099_v63, 1 }
  0xbf   : > { %3052 = vmatmul.mubr.bf16.gmra.mxu0 %v775_v26  ;;  %v2761_v24 = vpack.c.bf16 %v695_v3, %v696_v12  ;;  %v694_v13 = vsel %vm5089_vm9, %v667_v54, %v668_v59 }
  0xc0   : > { %3084 = vmatmul.mubr.msk.bf16.gmra.mxu1 %vm4224_vm1, %v2741_v28  ;;  %3100 = vmatpush3.bf16.msra.mxu0 %v3487_v22  ;;  %vm5077_vm1 = vmneg %vm4050_vm7 }
  0xc1   : > { %3301 = vmatpush3.bf16.msra.mxu1 %v3487_v22  ;;  %3101 = vmatprep.subr.bf16.mxu0 %v3488_v31  ;;  %vm4263_vm14 = vmpackc.low %vm5000_vm0, %vm5077_vm1 }
  0xc2   : > { %3294 = vmatprep.subr.bf16.mxu1 %v3488_v31  ;;  %3055 = vmatprep.mubr.bf16.mxu0 %v776_v49  ;;  %vm2759_vm1 = vmneg %vm4054_vm8 }
  0xc3   : > { %3087 = vmatprep.mubr.msk.bf16.mxu1 %vm2744_vm15, %v2745_v55  ;;  %vm5082_vm15 = vmmov %vm5080_vm2 }
  0xc4   : > { %3102 = vmatpush3.bf16.msra.mxu0 %v3488_v31  ;;  %v687_v15 = vsel %vm5082_vm15, %v674_v57, %v675_v58  ;;  %vm5083_vm0 = vmmov %vm5080_vm2 }
  0xc5   : > { %v688_v7 = vsel %vm5083_vm0, %v673_v56, %v674_v57  ;;  %vm2775_vm2 = vmneg %vm4070_vm12  ;;  %3302 = vmatpush3.bf16.msra.mxu1 %v3488_v31  ;;  %3103 = vmatprep.subr.bf16.mxu0 %v3489_v51  ;;  %vm5084_vm0 = vmmov 1   ;;  %v672_v31 = vrot.slane %v4142_v25, 1 }
  0xc6   : > { %3295 = vmatprep.subr.bf16.mxu1 %v3489_v51  ;;  %vm4298_vm15 = vmpackc.low %vm2759_vm1, %vm5084_vm0  ;;  %v2777_v19 = vpack.c.bf16 %v687_v15, %v688_v7 }
  0xc7   : > { %3056 = vmatmul.mubr.bf16.gmra.mxu0 %v777_v5  ;;  %vm4303_vm12 = vmpackc.low %vm2775_vm2, %vm5084_vm0 }
  0xc8   : > { %vm5090_vm7 = vmmov %vm5089_vm9  ;;  %3088 = vmatmul.mubr.msk.bf16.gmra.mxu1 %vm4263_vm14, %v2749_v6  ;;  %3104 = vmatpush3.bf16.msra.mxu0 %v3489_v51 }
  0xc9   : > { %v693_v20 = vsel %vm5090_vm7, %v668_v59, %v669_v2  ;;  %vm5091_vm8 = vmmov %vm5090_vm7  ;;  %3303 = vmatpush3.bf16.msra.mxu1 %v3489_v51  ;;  %3105 = vmatprep.subr.bf16.mxu0 %v3490_v14 }
  0xca   : > { %v686_v21 = vsel %vm5091_vm8, %v675_v58, %v676_v4  ;;  %vm4316_vm1 = vmpackc.low %vm2763_vm11, %vm5084_vm0  ;;  %3296 = vmatprep.subr.bf16.mxu1 %v3490_v14  ;;  %3107 = vmatprep.mubr.msk.bf16.mxu0 %vm4298_vm15, %v2761_v24  ;;  %v2765_v30 = vpack.c.bf16 %v693_v20, %v694_v13 }
  0xcb   : > { %vm5094_vm2 = vmmov %vm5090_vm7  ;;  %3115 = vmatprep.mubr.msk.bf16.mxu1 %vm4303_vm12, %v2777_v19  ;;  %vm5099_vm12 = vcmp.lt.s32.totalorder %v4000_v1, 7 }
  0xcc   : > { %v685_v23 = vsel %vm5094_vm2, %v676_v4, %v677_v60  ;;  %vm2779_vm7 = vmneg %vm4074_vm13  ;;  %v684_v29 = vsel %vm5094_vm2, %v677_v60, %v678_v16  ;;  %3106 = vmatpush3.bf16.msra.mxu0 %v3490_v14  ;;  %v689_v25 = vsel %vm5099_vm12, %v672_v31, %v673_v56 }
  0xcd   : > { %vm5095_vm9 = vmmov %vm5094_vm2  ;;  %v2781_v32 = vpack.c.bf16 %v685_v23, %v686_v21  ;;  %3304 = vmatpush3.bf16.msra.mxu1 %v3490_v14 }
  0xce   : > { %v691_v26 = vsel %vm5095_vm9, %v670_v9, %v671_v10  ;;  %vm5096_vm8 = vmmov %vm5094_vm2  ;;  %vm5098_vm9 = vnez %v5066_v47 }
  0xcf   : > { %v692_v27 = vsel %vm5096_vm8, %v669_v2, %v670_v9  ;;  %vm2767_vm14 = vmneg %vm4062_vm10  ;;  %3108 = vmatmul.mubr.msk.bf16.vlgmr.msra.gmra.mxu0 %vm4316_vm1, %v2765_v30 }
  0xd0   : > { %vm5097_vm11 = vmmov %vm5094_vm2  ;;  %v2769_v49 = vpack.c.bf16 %v691_v26, %v692_v27 }
  0xd1   : > { %v683_v28 = vsel %vm5097_vm11, %v678_v16, %v679_v18  ;;  %vm2783_vm8 = vmneg %vm5098_vm9  ;;  %vm5101_vm9 = vnez %v5060_v44 }
  0xd2   : > { %vm2780_vm15 = vmpackc.low %vm2779_vm7, %vm5084_vm0  ;;  %v2785_v54 = vpack.c.bf16 %v683_v28, %v684_v29 }
  0xd3   : > { %vm2768_vm11 = vmpackc.low %vm2767_vm14, %vm5084_vm0  ;;  %3116 = vmatmul.mubr.msk.bf16.vlgmr.msra.gmra.mxu1 %vm2780_vm15, %v2781_v32 }
  0xd4   : > { %vm2784_vm2 = vmpackc.low %vm2783_vm8, %vm5084_vm0  ;;  %3111 = vmatprep.mubr.msk.bf16.mxu0 %vm2768_vm11, %v2769_v49  ;;  %vm5104_vm8 = vnez %v5068_v48 }
  0xd5   : > { %vm5100_vm7 = vmmov %vm5099_vm12  ;;  %3119 = vmatprep.mubr.msk.bf16.mxu1 %vm2784_vm2, %v2785_v54 }
  0xd6   : > { %v690_v55 = vsel %vm5100_vm7, %v671_v10, %v672_v31  ;;  %vm2771_vm14 = vmneg %vm5101_vm9 }
  0xd7   : > { %vm5102_vm10 = vmmov %vm5100_vm7  ;;  %v2773_v50 = vpack.c.bf16 %v689_v25, %v690_v55 }
  0xd8   : > { %v682_v63 = vsel %vm5102_vm10, %v679_v18, %v680_v53  ;;  %vm5103_vm1 = vmmov %vm5100_vm7  ;;  %vm1348_vm10 = vcmask 1040384  }
  0xd9   : > { %v697_v57 = vsel %vm5103_vm1, %v680_v53, %v665_v52  ;;  %vm2787_vm15 = vmneg %vm5104_vm8 }
  0xda   : > { %vm2772_vm11 = vmpackc.low %vm2771_vm14, %vm5084_vm0  ;;  %v2789_v56 = vpack.c.bf16 %v697_v57, %v682_v63 }
  0xdb   : > { %vm2788_vm2 = vmpackc.low %vm2787_vm15, %vm5084_vm0  ;;  %3112 = vmatmul.mubr.msk.bf16.gmra.mxu0 %vm2772_vm11, %v2773_v50 }
  0xdc   : > { %3120 = vmatmul.mubr.msk.bf16.gmra.mxu1 %vm2788_vm2, %v2789_v56 }
 0x16f   : > { %v3045_v58 = vpop.f32.mrf.mxu0 }
 0x170   : > { %v3077_v62 = vpop.f32.mrf.mxu1 }
 0x171   : > { %v877_v8 = vpop.f32.mrf.mxu0  ;;  %v1031_v26 = vadd.f32 %v3077_v62, %v3045_v58 }
 0x172   : > { %v1022_v51 = vpop.f32.mrf.mxu1 }
 0x173   : > { %v3046_v59 = vpop.f32.mrf.mxu0  ;;  %v1023_v30 = vadd.f32 %v1022_v51, %v877_v8 }
 0x174   : > { %v3078_v61 = vpop.f32.mrf.mxu1 }
 0x175   : > { %v880_v0 = vpop.f32.mrf.mxu0  ;;  %v1034_v25 = vadd.f32 %v3078_v61, %v3046_v59 }
 0x176   : > { %v1025_v2 = vpop.f32.mrf.mxu1 }
 0x177   : > { %v3049_v52 = vpop.f32.mrf.mxu0  ;;  %v1026_v58 = vadd.f32 %v1025_v2, %v880_v0 }
 0x178   : > { %v3081_v5 = vpop.f32.mrf.mxu1 }
 0x179   : > { %v893_v3 = vpop.f32.mrf.mxu0 }
 0x17a   : > { %v1038_v12 = vpop.f32.mrf.mxu1 }
 0x17b   : > { %v3050_v4 = vpop.f32.mrf.mxu0 }
 0x17c   : > { %v3082_v6 = vpop.f32.mrf.mxu1 }
 0x17d   : > { %v4365_v15 = vpop.f32.mrf.mxu0 }
 0x17e   : > { %v4367_v7 = vpop.f32.mrf.mxu1 }
 0x17f   : > { %v3053_v9 = vpop.f32.mrf.mxu0 }
 0x180   : > { %v3085_v10 = vpop.f32.mrf.mxu1 }
 0x181   : > { %v909_v60 = vpop.f32.mrf.mxu0  ;;  %v1063_v28 = vadd.f32 %v3085_v10, %v3053_v9  ;;  %v1047_v9 = vadd.f32 %v3081_v5, %v3049_v52 }
 0x182   : > { %v1054_v14 = vpop.f32.mrf.mxu1 }
 0x183   : > { %v3054_v16 = vpop.f32.mrf.mxu0  ;;  %v1055_v49 = vadd.f32 %v1054_v14, %v909_v60  ;;  %v1039_v14 = vadd.f32 %v1038_v12, %v893_v3 }
 0x184   : > { %v3086_v18 = vpop.f32.mrf.mxu1 }
 0x185   : > { %v912_v17 = vpop.f32.mrf.mxu0  ;;  %v1066_v57 = vadd.f32 %v3086_v18, %v3054_v16 }
 0x186   : > { %v1057_v24 = vpop.f32.mrf.mxu1 }
 0x187   : > { %v3057_v11 = vpop.f32.mrf.mxu0  ;;  %v1058_v51 = vadd.f32 %v1057_v24, %v912_v17 }
 0x188   : > { %v3089_v19 = vpop.f32.mrf.mxu1 }
 0x189   : > { %v925_v13 = vpop.f32.mrf.mxu0  ;;  %v1079_v16 = vadd.f32 %v3089_v19, %v3057_v11 }
 0x18a   : > { %v1070_v20 = vpop.f32.mrf.mxu1 }
 0x18b   : > { %v3058_v21 = vpop.f32.mrf.mxu0  ;;  %v1071_v52 = vadd.f32 %v1070_v20, %v925_v13 }
 0x18c   : > { %v3090_v22 = vpop.f32.mrf.mxu1 }
 0x18d   : > { %v4370_v23 = vpop.f32.mrf.mxu0 }
 0x18e   : > { %v4372_v27 = vpop.f32.mrf.mxu1 }
 0x18f   : > { %v3109_v29 = vpop.f32.mrf.mxu0 }
 0x190   : > { %v1257_v31 = vadd.f32 %v3109_v29, %v1031_v26  ;;  %v1050_v29 = vadd.f32 %v3082_v6, %v3050_v4 }
 0x191   : > { %v1192_v54 = vpop.f32.mrf.mxu0 }
 0x192   : > { %1275 = vst [vmem:[%s4376_s29 + $0x10] sm:$0xff] %v1257_v31  ;;  %v1255_v55 = vadd.f32 %v1192_v54, %v1023_v30  ;;  %v1313_v3 = vmul.f32 %v1257_v31, %v1257_v31  ;;  %v1082_v54 = vadd.f32 %v3090_v22, %v3058_v21 }
 0x193   : > { %v3117_v32 = vpop.f32.mrf.mxu1  ;;  %v3110_v56 = vpop.f32.mrf.mxu0 }
 0x194   : > { %v4374_v53 = vadd.f32 %v3117_v32, %v1063_v28  ;;  %1273 = vst [vmem:[%s4376_s29] sm:$0xff] %v1255_v55  ;;  %v1258_v62 = vadd.f32 %v3110_v56, %v1034_v25  ;;  %v1311_v18 = vmul.f32 %v1255_v55, %v1255_v55 }
 0x195   : > { %v1224_v63 = vpop.f32.mrf.mxu1  ;;  %v1195_v61 = vpop.f32.mrf.mxu0 }
 0x196   : > { %1283 = vst [vmem:[%s4376_s29 + $0x50] sm:$0xff] %v4374_v53  ;;  %v4381_v50 = vadd.f32 %v1224_v63, %v1055_v49  ;;  %1276 = vst [vmem:[%s4376_s29 + $0x18] sm:$0xff] %v1258_v62  ;;  %v1256_v10 = vadd.f32 %v1195_v61, %v1026_v58  ;;  %v1042_v49 = vadd.f32 %v4367_v7, %v4365_v15 }
 0x197   : > { %v3118_v8 = vpop.f32.mrf.mxu1  ;;  %v1314_v6 = vmul.f32 %v1258_v62, %v1258_v62  ;;  %v1074_v63 = vadd.f32 %v4372_v27, %v4370_v23 }
 0x198   : > { %1281 = vst [vmem:[%s4376_s29 + $0x40] sm:$0xff] %v4381_v50  ;;  %v4386_v59 = vadd.f32 %v3118_v8, %v1066_v57  ;;  %1274 = vst [vmem:[%s4376_s29 + $0x8] sm:$0xff] %v1256_v10  ;;  %v1290_v17 = vadd.f32 %v1256_v10, %v1255_v55  ;;  %v1312_v24 = vmul.f32 %v1256_v10, %v1256_v10 }
 0x199   : > { %v1227_v60 = vpop.f32.mrf.mxu1 }
 0x19a   : > { %1284 = vst [vmem:[%s4376_s29 + $0x58] sm:$0xff] %v4386_v59  ;;  %v1264_v0 = vadd.f32 %v1227_v60, %v1058_v51  ;;  %v1291_v12 = vadd.f32 %v1290_v17, %v1257_v31  ;;  %v1327_v11 = vadd.f32 %v1312_v24, %v1311_v18 }
 0x19b   : > { %v3113_v2 = vpop.f32.mrf.mxu0 }
 0x19c   : > { %v1261_v26 = vadd.f32 %v3113_v2, %v1047_v9  ;;  %v3121_v28 = vpop.f32.mrf.mxu1  ;;  %1282 = vst [vmem:[%s4376_s29 + $0x48] sm:$0xff] %v1264_v0  ;;  %v1328_v13 = vadd.f32 %v1327_v11, %v1313_v3  ;;  %v1292_v20 = vadd.f32 %v1291_v12, %v1258_v62  ;;  %v1320_v17 = vmul.f32 %v1264_v0, %v1264_v0 }
 0x19d   : > { %v1269_v5 = vadd.f32 %v3121_v28, %v1079_v16  ;;  %v1208_v30 = vpop.f32.mrf.mxu0  ;;  %v1319_v16 = vmul.f32 %v4381_v50, %v4381_v50 }
 0x19e   : > { %1279 = vst [vmem:[%s4376_s29 + $0x30] sm:$0xff] %v1261_v26  ;;  %v1259_v19 = vadd.f32 %v1208_v30, %v1039_v14  ;;  %v1240_v32 = vpop.f32.mrf.mxu1  ;;  %v1329_v22 = vadd.f32 %v1328_v13, %v1314_v6  ;;  %v1317_v9 = vmul.f32 %v1261_v26, %v1261_v26 }
 0x19f   : > { %1287 = vst [vmem:[%s4376_s29 + $0x70] sm:$0xff] %v1269_v5  ;;  %v1267_v25 = vadd.f32 %v1240_v32, %v1071_v52  ;;  %v3114_v4 = vpop.f32.mrf.mxu0 }
 0x1a0   : > { %1277 = vst [vmem:[%s4376_s29 + $0x20] sm:$0xff] %v1259_v19  ;;  %v1262_v31 = vadd.f32 %v3114_v4, %v1050_v29  ;;  %v3122_v55 = vpop.f32.mrf.mxu1  ;;  %v1293_v7 = vadd.f32 %v1292_v20, %v1259_v19  ;;  %v1315_v21 = vmul.f32 %v1259_v19, %v1259_v19  ;;  %v1321_v29 = vmul.f32 %v4374_v53, %v4374_v53 }
 0x1a1   : > { %1285 = vst [vmem:[%s4376_s29 + $0x60] sm:$0xff] %v1267_v25  ;;  %v1270_v57 = vadd.f32 %v3122_v55, %v1082_v54  ;;  %v1211_v15 = vpop.f32.mrf.mxu0  ;;  %v1323_v11 = vmul.f32 %v1267_v25, %v1267_v25  ;;  %v1325_v4 = vmul.f32 %v1269_v5, %v1269_v5 }
 0x1a2   : > { %1280 = vst [vmem:[%s4376_s29 + $0x38] sm:$0xff] %v1262_v31  ;;  %v1260_v56 = vadd.f32 %v1211_v15, %v1042_v49  ;;  %v1243_v58 = vpop.f32.mrf.mxu1  ;;  %v1330_v51 = vadd.f32 %v1329_v22, %v1315_v21  ;;  %v1318_v27 = vmul.f32 %v1262_v31, %v1262_v31 }
 0x1a3   : > { %1288 = vst [vmem:[%s4376_s29 + $0x78] sm:$0xff] %v1270_v57  ;;  %v1268_v8 = vadd.f32 %v1243_v58, %v1074_v63  ;;  %v1326_v13 = vmul.f32 %v1270_v57, %v1270_v57 }
 0x1a4   : > { %1278 = vst [vmem:[%s4376_s29 + $0x28] sm:$0xff] %v1260_v56  ;;  %v1294_v62 = vadd.f32 %v1293_v7, %v1260_v56  ;;  %v1316_v61 = vmul.f32 %v1260_v56, %v1260_v56 }
 0x1a5   : > { %1286 = vst [vmem:[%s4376_s29 + $0x68] sm:$0xff] %v1268_v8  ;;  %v1324_v49 = vmul.f32 %v1268_v8, %v1268_v8 }
 0x1a6   : > { %v1295_v10 = vadd.f32 %v1294_v62, %v1261_v26  ;;  %v1331_v23 = vadd.f32 %v1330_v51, %v1316_v61  ;;  %v1322_v26 = vmul.f32 %v4386_v59, %v4386_v59 }
 0x1a8   : > { %v1296_v60 = vadd.f32 %v1295_v10, %v1262_v31  ;;  %v1332_v14 = vadd.f32 %v1331_v23, %v1317_v9 }
 0x1aa   : > { %v1297_v2 = vadd.f32 %v1296_v60, %v4381_v50  ;;  %v1333_v18 = vadd.f32 %v1332_v14, %v1318_v27 }
 0x1ac   : > { %v1334_v24 = vadd.f32 %v1333_v18, %v1319_v16  ;;  %v1298_v28 = vadd.f32 %v1297_v2, %v1264_v0 }
 0x1ae   : > { %v1299_v52 = vadd.f32 %v1298_v28, %v4374_v53  ;;  %v1335_v30 = vadd.f32 %v1334_v24, %v1320_v17 }
 0x1b0   : > { %v1300_v3 = vadd.f32 %v1299_v52, %v4386_v59  ;;  %v1336_v12 = vadd.f32 %v1335_v30, %v1321_v29 }
 0x1b2   : > { %v1301_v19 = vadd.f32 %v1300_v3, %v1267_v25  ;;  %v1337_v32 = vadd.f32 %v1336_v12, %v1322_v26 }
 0x1b4   : > { %v1302_v50 = vadd.f32 %v1301_v19, %v1268_v8  ;;  %v1338_v54 = vadd.f32 %v1337_v32, %v1323_v11  ;;  %v1289_v8 = vld [vmem:[#allocation4] sm:$0x3] }
 0x1b6   : > { %v1303_v0 = vadd.f32 %v1302_v50, %v1269_v5  ;;  %v1339_v6 = vadd.f32 %v1338_v54, %v1324_v49 }
 0x1b8   : > { %v1304_v20 = vadd.f32 %v1303_v0, %v1270_v57  ;;  %v1340_v31 = vadd.f32 %v1339_v6, %v1325_v4 }
 0x1ba   : > { %v1305_v53 = vrot.slane %v1304_v20, 4  ;;  %v1341_v55 = vadd.f32 %v1340_v31, %v1326_v13 }
 0x1bc   : > { %v1306_v63 = vadd.f32 %v1305_v53, %v1304_v20  ;;  %v1342_v15 = vrot.slane %v1341_v55, 4 }
 0x1be   : > { %v1307_v7 = vrot.slane %v1306_v63, 2  ;;  %v1343_v21 = vadd.f32 %v1342_v15, %v1341_v55 }
 0x1c0   : > { %v1308_v59 = vadd.f32 %v1307_v7, %v1306_v63  ;;  %v1344_v22 = vrot.slane %v1343_v21, 2 }
 0x1c2   : > { %v1309_v56 = vrot.slane %v1308_v59, 1  ;;  %v1345_v25 = vadd.f32 %v1344_v22, %v1343_v21 }
 0x1c4   : > { %v1346_v58 = vrot.slane %v1345_v25, 1  ;;  %v1310_v51 = vadd.f32 %v1309_v56, %v1308_v59 }
 0x1c6   : > { %v1347_v62 = vadd.f32 %v1346_v58, %v1345_v25 }
 0x1c8   : > { %v1349_v5 = vsel %vm1348_vm10, %v1310_v51, %v1347_v62 }
 0x1c9   : > { %v1350_v61 = vadd.f32 %v1349_v5, %v1289_v8 }
 0x1cb   : > { %1351 = vst [vmem:[#allocation4] sm:$0x3] %v1350_v61 }
 0x1cc PF: > { %p2792_p3 = scmp.ne.s32.totalorder %s3741_s25, 1 }
 0x1cd   : > { %p2793_p7 = scmp.ne.s32.totalorder (!%p2792_p3), %s3737_s24, 0 }
 0x1ce   : > { %1355 = sbr.rel (%p2792_p3) target bundleno = 1043 (0x413), region = 68 }
 0x1d3   : > { %1358 = sbr.rel (%p2793_p7) target bundleno = 729 (0x2d9), region = 72  ;;  %s5105_s13 = sld [smem:[#allocation32_spill]] (!%p2793_p7) }
 0x1d8   : > { %v1377_v57 = vld [vmem:[#allocation16 + $0x78] sm:$0xff]  ;;  %v3765_v9 = vmov 0.0   ;;  %v1376_v10 = vld [vmem:[#allocation16 + $0x70] sm:$0xff]  ;;  %vm3766_vm0 = vmmov 0   ;;  %v1375_v23 = vld [vmem:[#allocation16 + $0x68] sm:$0xff] }
 0x1d9   : > { %3123 = vmatprep.subr.mxu0 %v3765_v9  ;;  %3155 = vmatprep.mubr.msk.f32.mxu0 %vm3766_vm0, %v3765_v9  ;;  %v1374_v27 = vld [vmem:[#allocation16 + $0x60] sm:$0xff]  ;;  %v1373_v60 = vld [vmem:[#allocation16 + $0x58] sm:$0xff]  ;;  %v1372_v14 = vld [vmem:[#allocation16 + $0x50] sm:$0xff] }
 0x1da   : > { %3124 = vmatpush3.msra.mxu0 %v1377_v57  ;;  %v1371_v16 = vld [vmem:[#allocation16 + $0x48] sm:$0xff]  ;;  %v1370_v2 = vld [vmem:[#allocation16 + $0x40] sm:$0xff]  ;;  %v1369_v18 = vld [vmem:[#allocation16 + $0x38] sm:$0xff] }
 0x1db   : > { %3125 = vmatprep.subr.mxu0 %v3765_v9  ;;  %v1368_v17 = vld [vmem:[#allocation16 + $0x30] sm:$0xff]  ;;  %v1367_v24 = vld [vmem:[#allocation16 + $0x28] sm:$0xff]  ;;  %v1366_v28 = vld [vmem:[#allocation16 + $0x20] sm:$0xff] }
 0x1dc   : > { %3126 = vmatpush3.msra.mxu0 %v1376_v10  ;;  %v1365_v29 = vld [vmem:[#allocation16 + $0x18] sm:$0xff]  ;;  %v1364_v52 = vld [vmem:[#allocation16 + $0x10] sm:$0xff]  ;;  %v1363_v30 = vld [vmem:[#allocation16 + $0x8] sm:$0xff] }
 0x1dd   : > { %3127 = vmatprep.subr.mxu0 %v3765_v9  ;;  %v1362_v26 = vld [vmem:[#allocation16] sm:$0xff]  ;;  %v1361_v3 = vld [vmem:[#allocation4] sm:$0x3] }
 0x1de   : > { %3128 = vmatpush3.msra.mxu0 %v1375_v23  ;;  %v1359_v4 = vld [vmem:[%s5105_s13] sm:$0x1]  ;;  %v1360_v13 = vld [vmem:[%s5105_s13 + $0x1] sm:$0x1] }
 0x1df   : > { %3129 = vmatprep.subr.mxu0 %v3765_v9 }
 0x1e0   : > { %3130 = vmatpush3.msra.mxu0 %v1374_v27 }
 0x1e1   : > { %3131 = vmatprep.subr.mxu0 %v3765_v9 }
 0x1e2   : > { %3132 = vmatpush3.msra.mxu0 %v1373_v60 }
 0x1e3   : > { %3133 = vmatprep.subr.mxu0 %v3765_v9 }
 0x1e4   : > { %3134 = vmatpush3.msra.mxu0 %v1372_v14 }
 0x1e5   : > { %3135 = vmatprep.subr.mxu0 %v3765_v9 }
 0x1e6   : > { %3136 = vmatpush3.msra.mxu0 %v1371_v16 }
 0x1e7   : > { %3137 = vmatprep.subr.mxu0 %v3765_v9 }
 0x1e8   : > { %3138 = vmatpush3.msra.mxu0 %v1370_v2 }
 0x1e9   : > { %3139 = vmatprep.subr.mxu0 %v3765_v9 }
 0x1ea   : > { %3140 = vmatpush3.msra.mxu0 %v1369_v18 }
 0x1eb   : > { %3141 = vmatprep.subr.mxu0 %v3765_v9 }
 0x1ec   : > { %3142 = vmatpush3.msra.mxu0 %v1368_v17 }
 0x1ed   : > { %3143 = vmatprep.subr.mxu0 %v3765_v9 }
 0x1ee   : > { %3144 = vmatpush3.msra.mxu0 %v1367_v24 }
 0x1ef   : > { %3145 = vmatprep.subr.mxu0 %v3765_v9 }
 0x1f0   : > { %3146 = vmatpush3.msra.mxu0 %v1366_v28 }
 0x1f1   : > { %3147 = vmatprep.subr.mxu0 %v3765_v9 }
 0x1f2   : > { %3148 = vmatpush3.msra.mxu0 %v1365_v29 }
 0x1f3   : > { %3149 = vmatprep.subr.mxu0 %v3765_v9 }
 0x1f4   : > { %3150 = vmatpush3.msra.mxu0 %v1364_v52 }
 0x1f5   : > { %3151 = vmatprep.subr.mxu0 %v3765_v9 }
 0x1f6   : > { %3152 = vmatpush3.msra.mxu0 %v1363_v30 }
 0x1f7   : > { %3153 = vmatprep.subr.mxu0 %v3765_v9 }
 0x1f8   : > { %3154 = vmatpush3.msra.mxu0 %v1362_v26 }
 0x1f9   : > { %3156 = vmatmul.mubr.f32.vlgmr.msra.gmra.mxu0 %v1361_v3 }
 0x2b9   : > { %v1444_v12 = vpop.f32.mrf.mxu0 }
 0x2ba   : > { %v1448_v11 = vmul.f32 %v1444_v12, %v1444_v12 }
 0x2bb   : > { %v3157_v19 = vpop.f32.mrf.mxu0 }
 0x2bc   : > { %v1450_v32 = vrot.slane %v1448_v11, 7 }
 0x2be   : > { %v1452_v50 = vsub.f32 %v1444_v12, %v1450_v32 }
 0x2c0   : > { %v1453_v49 = vadd.f32 1e-05, %v1452_v50 }
 0x2c2   : > { %3491 = vrsqrt.f32 %v1453_v49 }
 0x2cf   : > { %v3492_v54 = vpop.eup %3491 }
 0x2d0   : > { %v1456_v0 = vrot.slane %v3492_v54, 1 }
 0x2d2   : > { %v1458_v6 = vmul.f32 %v1456_v0, %v1359_v4 }
 0x2d4   : > { %v1459_v20 = vmul.f32 %v1458_v6, %v1444_v12  ;;  %1461 = vst [vmem:[#allocation6] sm:$0x1] %v1458_v6 }
 0x2d6   : > { %v1460_v31 = vsub.f32 %v1360_v13, %v1459_v20 }
 0x2d8   : > { %1462 = vst [vmem:[#allocation7] sm:$0x1] %v1460_v31 }
 0x2d9 PF: > { %v3493_v53 = vld [vmem:[#allocation15 + $0x78] sm:$0xff]   ;;  %v3495_v63 = vld [vmem:[#allocation15 + $0x70] sm:$0xff]   ;;  %v3497_v7 = vld [vmem:[#allocation15 + $0x68] sm:$0xff]   ;;  %s2794_s17 = sshll.u32 %s3737_s24, 7  ;;  %vm1559_vm12 = vcmp.lt.s32.totalorder %v4000_v1, 1  ;;  %vm5106_vm7 = vnez %v5038_v33  ;;  %vm3767_vm14 = vmmov 1   ;;  %vm5109_vm8 = vnez %v5040_v34 }
 0x2da   : > { %v3494_v55 = vld [vmem:[#allocation15 + $0x38] sm:$0xff]   ;;  %3158 = vmatprep.subr.bf16.mxu0 %v3493_v53  ;;  %v3496_v15 = vld [vmem:[#allocation15 + $0x30] sm:$0xff]   ;;  %v3498_v21 = vld [vmem:[#allocation15 + $0x28] sm:$0xff]   ;;  %s4425_s5 = scalar_lea.vmem [#allocation2], %s2794_s17  ;;  %vm5112_vm2 = vnez %v5042_v35  ;;  %s4766_s18 = scalar_lea.vmem [#allocation3], %s2794_s17 }
 0x2db   : > { %3190 = vmatprep.subr.bf16.mxu1 %v3494_v55  ;;  %3159 = vmatpush3.bf16.msra.mxu0 %v3493_v53  ;;  %v3499_v59 = vld [vmem:[#allocation15 + $0x60] sm:$0xff]   ;;  %v3501_v56 = vld [vmem:[#allocation15 + $0x58] sm:$0xff]   ;;  %v3503_v58 = vld [vmem:[#allocation15 + $0x50] sm:$0xff]  }
 0x2dc   : > { %3191 = vmatpush3.bf16.msra.mxu1 %v3494_v55  ;;  %3160 = vmatprep.subr.bf16.mxu0 %v3495_v63  ;;  %v3500_v22 = vld [vmem:[#allocation15 + $0x20] sm:$0xff]   ;;  %v3502_v25 = vld [vmem:[#allocation15 + $0x18] sm:$0xff]   ;;  %v3504_v5 = vld [vmem:[#allocation15 + $0x10] sm:$0xff]  }
 0x2dd   : > { %3192 = vmatprep.subr.bf16.mxu1 %v3496_v15  ;;  %v1465_v8 = vld [vmem:[%s4425_s5] sm:$0xff]  ;;  %v1466_v51 = vld [vmem:[%s4425_s5 + $0x8] sm:$0xff]  ;;  %v1480_v10 = vld [vmem:[%s4425_s5 + $0x78] sm:$0xff] }
 0x2de   : > { %v4429_v62 = vld [vmem:[#allocation6] ss:$0 sm:$0xff]  ;;  %v1467_v27 = vld [vmem:[%s4425_s5 + $0x10] sm:$0xff]  ;;  %v1468_v60 = vld [vmem:[%s4425_s5 + $0x18] sm:$0xff] }
 0x2df   : > { %3161 = vmatpush3.bf16.msra.mxu0 %v3495_v63  ;;  %v1488_v61 = vmul.f32 %v4429_v62, %v1465_v8  ;;  %v1489_v57 = vmul.f32 %v4429_v62, %v1466_v51  ;;  %v4433_v9 = vld [vmem:[#allocation7] ss:$0 sm:$0xff]  ;;  %v1503_v23 = vmul.f32 %v4429_v62, %v1480_v10  ;;  %v1490_v2 = vmul.f32 %v4429_v62, %v1467_v27  ;;  %v3505_v17 = vld [vmem:[#allocation15 + $0x48] sm:$0xff]   ;;  %v1470_v11 = vld [vmem:[%s4425_s5 + $0x28] sm:$0xff] }
 0x2e0   : > { %3193 = vmatpush3.bf16.msra.mxu1 %v3496_v15  ;;  %3162 = vmatprep.subr.bf16.mxu0 %v3497_v7  ;;  %v1491_v18 = vmul.f32 %v4429_v62, %v1468_v60  ;;  %v3506_v28 = vld [vmem:[#allocation15 + $0x8] sm:$0xff]   ;;  %v1469_v3 = vld [vmem:[%s4425_s5 + $0x20] sm:$0xff]  ;;  %v3507_v50 = vld [vmem:[#allocation15 + $0x40] sm:$0xff]   ;;  %v1493_v31 = vmul.f32 %v4429_v62, %v1470_v11 }
 0x2e1   : > { %3194 = vmatprep.subr.bf16.mxu1 %v3498_v21  ;;  %v1511_v14 = vadd.f32 %v4433_v9, %v1488_v61  ;;  %v1512_v16 = vadd.f32 %v4433_v9, %v1489_v57  ;;  %v1526_v24 = vadd.f32 %v4433_v9, %v1503_v23  ;;  %v1513_v30 = vadd.f32 %v4433_v9, %v1490_v2  ;;  %v1471_v32 = vld [vmem:[%s4425_s5 + $0x30] sm:$0xff]  ;;  %vm2813_vm9 = vmneg %vm5106_vm7  ;;  %v3508_v20 = vld [vmem:[#allocation15] sm:$0xff]  }
 0x2e2   : > { %v1514_v26 = vadd.f32 %v4433_v9, %v1491_v18  ;;  %v1492_v19 = vmul.f32 %v4429_v62, %v1469_v3  ;;  %v1472_v55 = vld [vmem:[%s4425_s5 + $0x38] sm:$0xff]  ;;  %v1494_v63 = vmul.f32 %v4429_v62, %v1471_v32  ;;  %vm4482_vm1 = vmpackc.low %vm3767_vm14, %vm2813_vm9  ;;  %v1474_v8 = vld [vmem:[%s4425_s5 + $0x48] sm:$0xff] }
 0x2e3   : > { %3163 = vmatpush3.bf16.msra.mxu0 %v3497_v7  ;;  %v4444_v29 = vmax.f32 %v1511_v14, 0.0  ;;  %v4446_v52 = vmax.f32 %v1512_v16, 0.0  ;;  %v4451_v12 = vmax.f32 %v1526_v24, 0.0  ;;  %v4464_v6 = vmax.f32 %v1513_v30, 0.0  ;;  %vm2817_vm15 = vmneg %vm5109_vm8  ;;  %v3509_v33 = vld [vmem:[#allocation15 + $0xb8] sm:$0xff]   ;;  %v1475_v18 = vld [vmem:[%s4425_s5 + $0x50] sm:$0xff] }
 0x2e4   : > { %3195 = vmatpush3.bf16.msra.mxu1 %v3498_v21  ;;  %3164 = vmatprep.subr.bf16.mxu0 %v3499_v59  ;;  %v4466_v13 = vmax.f32 %v1514_v26, 0.0  ;;  %v1515_v53 = vadd.f32 %v4433_v9, %v1492_v19  ;;  %v1517_v61 = vadd.f32 %v4433_v9, %v1494_v63  ;;  %v1497_v60 = vmul.f32 %v4429_v62, %v1474_v8  ;;  %vm4516_vm11 = vmpackc.low %vm3767_vm14, %vm2817_vm15 }
 0x2e5   : > { %3196 = vmatprep.subr.bf16.mxu1 %v3500_v22  ;;  %v1729_v49 = vpack.c.bf16 %v4446_v52, %v4444_v29  ;;  %v1543_v54 = vrot.slane %v4444_v29, 7  ;;  %v1544_v4 = vrot.slane %v4446_v52, 7  ;;  %v1558_v0 = vrot.slane %v4451_v12, 7  ;;  %vm2821_vm10 = vmneg %vm5112_vm2 }
 0x2e6   : > { %v4493_v51 = vmax.f32 %v1515_v53, 0.0  ;;  %v1730_v14 = vpack.c.bf16 %v4466_v13, %v4464_v6  ;;  %v4521_v26 = vmax.f32 %v1517_v61, 0.0  ;;  %v1520_v32 = vadd.f32 %v4433_v9, %v1497_v60  ;;  %vm4550_vm0 = vmpackc.low %vm3767_vm14, %vm2821_vm10  ;;  %v3516_v60 = vld [vmem:[#allocation15 + $0x80] sm:$0xff]  }
 0x2e7   : > { %3165 = vmatpush3.bf16.msra.mxu0 %v3499_v59  ;;  %3174 = vmatprep.mubr.bf16.mxu0 %v1729_v49  ;;  %v1574_v15 = vsel %vm1559_vm12, %v1543_v54, %v1544_v4  ;;  %v1575_v7 = vsel %vm1559_vm12, %v1558_v0, %v1543_v54  ;;  %v1473_v59 = vld [vmem:[%s4425_s5 + $0x40] sm:$0xff]  ;;  %vm2825_vm7 = vmneg %vm4034_vm3  ;;  %vm5119_vm15 = vnez %v5052_v40  ;;  %vm1640_vm2 = vcmp.lt.s32.totalorder %v4000_v1, 7 }
 0x2e8   : > { %3197 = vmatpush3.bf16.msra.mxu1 %v3500_v22  ;;  %3166 = vmatprep.subr.bf16.mxu0 %v3501_v56  ;;  %v2815_v22 = vpack.c.bf16 %v1574_v15, %v1575_v7  ;;  %v1496_v57 = vmul.f32 %v4429_v62, %v1473_v59  ;;  %v1547_v16 = vrot.slane %v4493_v51, 7  ;;  %v1549_v54 = vrot.slane %v4521_v26, 7  ;;  %vm4578_vm3 = vmpackc.low %vm3767_vm14, %vm2825_vm7 }
 0x2e9   : > { %3198 = vmatprep.subr.bf16.mxu1 %v3502_v25  ;;  %v4542_v63 = vmax.f32 %v1520_v32, 0.0  ;;  %vm2829_vm9 = vmneg %vm4038_vm4  ;;  %vm5123_vm7 = vnez %v5062_v45 }
 0x2ea   : > { %3206 = vmatprep.mubr.msk.bf16.mxu1 %vm4482_vm1, %v2815_v22  ;;  %v1519_v3 = vadd.f32 %v4433_v9, %v1496_v57  ;;  %v1478_v22 = vld [vmem:[%s4425_s5 + $0x68] sm:$0xff]  ;;  %vm2830_vm4 = vmpackc.low %vm3767_vm14, %vm2829_vm9  ;;  %vm5124_vm9 = vnez %v5056_v42 }
 0x2eb   : > { %3167 = vmatpush3.bf16.msra.mxu0 %v3501_v56  ;;  %v1545_v56 = vrot.slane %v4464_v6, 7  ;;  %v1552_v8 = vrot.slane %v4542_v63, 7  ;;  %v1501_v36 = vmul.f32 %v4429_v62, %v1478_v22  ;;  %vm2833_vm1 = vmneg %vm4042_vm5  ;;  %v1624_v22 = vrot.slane %v4444_v29, 1 }
 0x2ec   : > { %3199 = vmatpush3.bf16.msra.mxu1 %v3502_v25  ;;  %3168 = vmatprep.subr.bf16.mxu0 %v3503_v58  ;;  %v1546_v25 = vrot.slane %v4466_v13, 7  ;;  %vm4616_vm8 = vmpackc.low %vm3767_vm14, %vm2833_vm1 }
 0x2ed   : > { %3200 = vmatprep.subr.bf16.mxu1 %v3504_v5  ;;  %v1573_v23 = vsel %vm1559_vm12, %v1544_v4, %v1545_v56  ;;  %v4537_v4 = vmax.f32 %v1519_v3, 0.0  ;;  %vm2837_vm5 = vmneg %vm4046_vm6 }
 0x2ee   : > { %v1572_v10 = vsel %vm1559_vm12, %v1545_v56, %v1546_v25  ;;  %v1571_v11 = vsel %vm1559_vm12, %v1546_v25, %v1547_v16  ;;  %v1479_v56 = vld [vmem:[%s4425_s5 + $0x70] sm:$0xff]  ;;  %vm2838_vm6 = vmpackc.low %vm3767_vm14, %vm2837_vm5 }
 0x2ef   : > { %3169 = vmatpush3.bf16.msra.mxu0 %v3503_v58  ;;  %v1516_v58 = vadd.f32 %v4433_v9, %v1493_v31  ;;  %v2819_v24 = vpack.c.bf16 %v1572_v10, %v1573_v23  ;;  %v1477_v31 = vld [vmem:[%s4425_s5 + $0x60] sm:$0xff]  ;;  %v1551_v7 = vrot.slane %v4537_v4, 7  ;;  %v1502_v23 = vmul.f32 %v4429_v62, %v1479_v56 }
 0x2f0   : > { %3201 = vmatpush3.bf16.msra.mxu1 %v3504_v5  ;;  %3170 = vmatprep.subr.bf16.mxu0 %v3505_v17  ;;  %v1495_v5 = vmul.f32 %v4429_v62, %v1472_v55  ;;  %v1625_v56 = vrot.slane %v4446_v52, 1  ;;  %v1632_v39 = vrot.slane %v4537_v4, 1 }
 0x2f1   : > { %3202 = vmatprep.subr.bf16.mxu1 %v3506_v28  ;;  %v4504_v27 = vmax.f32 %v1516_v58, 0.0  ;;  %v3511_v58 = vld [vmem:[#allocation15 + $0xa8] sm:$0xff]   ;;  %v1525_v3 = vadd.f32 %v4433_v9, %v1502_v23 }
 0x2f2   : > { %v1518_v2 = vadd.f32 %v4433_v9, %v1495_v5  ;;  %v1500_v5 = vmul.f32 %v4429_v62, %v1477_v31  ;;  %v1655_v40 = vsel %vm1640_vm2, %v1624_v22, %v1625_v56 }
 0x2f3   : > { %3171 = vmatpush3.bf16.msra.mxu0 %v3505_v17  ;;  %v1548_v30 = vrot.slane %v4504_v27, 7  ;;  %v1731_v34 = vpack.c.bf16 %v4504_v27, %v4493_v51  ;;  %v3512_v17 = vld [vmem:[#allocation15 + $0xa0] sm:$0xff]  }
 0x2f4   : > { %3203 = vmatpush3.bf16.msra.mxu1 %v3506_v28  ;;  %3172 = vmatprep.subr.bf16.mxu0 %v3507_v50  ;;  %v3510_v28 = vld [vmem:[#allocation15 + $0xb0] sm:$0xff]   ;;  %v4530_v19 = vmax.f32 %v1518_v2, 0.0  ;;  %v1523_v10 = vadd.f32 %v4433_v9, %v1500_v5  ;;  %v3515_v5 = vld [vmem:[#allocation15 + $0x88] sm:$0xff]  }
 0x2f5   : > { %3204 = vmatprep.subr.bf16.mxu1 %v3508_v20  ;;  %v1570_v49 = vsel %vm1559_vm12, %v1547_v16, %v1548_v30  ;;  %v1569_v35 = vsel %vm1559_vm12, %v1548_v30, %v1549_v54  ;;  %v1566_v16 = vsel %vm1559_vm12, %v1551_v7, %v1552_v8 }
 0x2f6   : > { %v2823_v53 = vpack.c.bf16 %v1570_v49, %v1571_v11  ;;  %v1550_v55 = vrot.slane %v4530_v19, 7  ;;  %v1732_v57 = vpack.c.bf16 %v4530_v19, %v4521_v26  ;;  %v4592_v30 = vmax.f32 %v1523_v10, 0.0  ;;  %v3513_v49 = vld [vmem:[#allocation15 + $0x98] sm:$0xff]  }
 0x2f7   : > { %3173 = vmatpush3.bf16.msra.mxu0 %v3507_v50  ;;  %v1476_v50 = vld [vmem:[%s4425_s5 + $0x58] sm:$0xff] }
 0x2f8   : > { %3205 = vmatpush3.bf16.msra.mxu1 %v3508_v20  ;;  %3222 = vmatprep.subr.bf16.mxu0 %v3509_v33  ;;  %v1498_v20 = vmul.f32 %v4429_v62, %v1475_v18  ;;  %v1499_v21 = vmul.f32 %v4429_v62, %v1476_v50  ;;  %v1568_v25 = vsel %vm1559_vm12, %v1549_v54, %v1550_v55  ;;  %v1555_v37 = vrot.slane %v4592_v30, 7 }
 0x2f9   : > { %3305 = vmatprep.subr.bf16.mxu1 %v3509_v33  ;;  %v1567_v2 = vsel %vm1559_vm12, %v1550_v55, %v1551_v7  ;;  %v3514_v7 = vld [vmem:[#allocation15 + $0x90] sm:$0xff]  }
 0x2fa   : > { %3175 = vmatmul.mubr.bf16.vlgmr.msra.gmra.mxu0 %v1730_v14  ;;  %v1521_v59 = vadd.f32 %v4433_v9, %v1498_v20  ;;  %v1522_v61 = vadd.f32 %v4433_v9, %v1499_v21  ;;  %v2827_v14 = vpack.c.bf16 %v1568_v25, %v1569_v35  ;;  %v4611_v20 = vmax.f32 %v1525_v3, 0.0 }
 0x2fb   : > { %3207 = vmatmul.mubr.msk.bf16.vlgmr.msra.gmra.mxu1 %vm4516_vm11, %v2819_v24  ;;  %3223 = vmatpush3.bf16.msra.mxu0 %v3509_v33  ;;  %v1524_v24 = vadd.f32 %v4433_v9, %v1501_v36  ;;  %vm2841_vm11 = vmneg %vm5119_vm15  ;;  %v1626_v35 = vrot.slane %v4464_v6, 1 }
 0x2fc   : > { %3313 = vmatpush3.bf16.msra.mxu1 %v3509_v33  ;;  %3224 = vmatprep.subr.bf16.mxu0 %v3510_v28  ;;  %v4568_v33 = vmax.f32 %v1521_v59, 0.0  ;;  %v4586_v18 = vmax.f32 %v1522_v61, 0.0  ;;  %v1557_v21 = vrot.slane %v4611_v20, 7  ;;  %v1627_v61 = vrot.slane %v4466_v13, 1  ;;  %vm4653_vm10 = vmpackc.low %vm3767_vm14, %vm2841_vm11 }
 0x2fd   : > { %3306 = vmatprep.subr.bf16.mxu1 %v3510_v28  ;;  %3178 = vmatprep.mubr.bf16.mxu0 %v1731_v34  ;;  %v1733_v34 = vpack.c.bf16 %v4542_v63, %v4537_v4  ;;  %v4598_v32 = vmax.f32 %v1524_v24, 0.0  ;;  %v1654_v13 = vsel %vm1640_vm2, %v1625_v56, %v1626_v35  ;;  %vm2873_vm15 = vmneg %vm4074_vm13  ;;  %vm5131_vm11 = vnez %v5058_v43 }
 0x2fe   : > { %3210 = vmatprep.mubr.msk.bf16.mxu1 %vm4550_vm0, %v2823_v53  ;;  %v1553_v62 = vrot.slane %v4568_v33, 7  ;;  %v1554_v11 = vrot.slane %v4586_v18, 7  ;;  %v1734_v31 = vpack.c.bf16 %v4586_v18, %v4568_v33  ;;  %v1634_v52 = vrot.slane %v4568_v33, 1 }
 0x2ff   : > { %3225 = vmatpush3.bf16.msra.mxu0 %v3510_v28  ;;  %v1556_v54 = vrot.slane %v4598_v32, 7  ;;  %v1735_v59 = vpack.c.bf16 %v4598_v32, %v4592_v30  ;;  %v1560_v6 = vsel %vm1559_vm12, %v1557_v21, %v1558_v0  ;;  %v1635_v0 = vrot.slane %v4586_v18, 1 }
 0x300   : > { %3314 = vmatpush3.bf16.msra.mxu1 %v3510_v28  ;;  %3226 = vmatprep.subr.bf16.mxu0 %v3511_v58  ;;  %v2831_v28 = vpack.c.bf16 %v1566_v16, %v1567_v2  ;;  %v1564_v9 = vsel %vm1559_vm12, %v1553_v62, %v1554_v11  ;;  %v1565_v50 = vsel %vm1559_vm12, %v1552_v8, %v1553_v62  ;;  %v1637_v45 = vrot.slane %v4598_v32, 1 }
 0x301   : > { %3307 = vmatprep.subr.bf16.mxu1 %v3511_v58  ;;  %v2835_v55 = vpack.c.bf16 %v1564_v9, %v1565_v50  ;;  %v1562_v38 = vsel %vm1559_vm12, %v1555_v37, %v1556_v54  ;;  %v1563_v15 = vsel %vm1559_vm12, %v1554_v11, %v1555_v37  ;;  %v1561_v8 = vsel %vm1559_vm12, %v1556_v54, %v1557_v21 }
 0x302   : > { %3179 = vmatmul.mubr.bf16.gmra.mxu0 %v1732_v57  ;;  %v2839_v25 = vpack.c.bf16 %v1562_v38, %v1563_v15  ;;  %v1628_v57 = vrot.slane %v4493_v51, 1  ;;  %v1736_v33 = vpack.c.bf16 %v4451_v12, %v4611_v20  ;;  %vm5122_vm12 = vnez %v5054_v41 }
 0x303   : > { %3211 = vmatmul.mubr.msk.bf16.gmra.mxu1 %vm4578_vm3, %v2827_v14  ;;  %3227 = vmatpush3.bf16.msra.mxu0 %v3511_v58  ;;  %vm2853_vm0 = vmneg %vm5122_vm12  ;;  %v1636_v51 = vrot.slane %v4592_v30, 1  ;;  %v2843_v36 = vpack.c.bf16 %v1560_v6, %v1561_v8  ;;  %v1629_v41 = vrot.slane %v4504_v27, 1  ;;  %v1630_v14 = vrot.slane %v4521_v26, 1 }
 0x304   : > { %3315 = vmatpush3.bf16.msra.mxu1 %v3511_v58  ;;  %3228 = vmatprep.subr.bf16.mxu0 %v3512_v17  ;;  %v1633_v58 = vrot.slane %v4542_v63, 1  ;;  %vm2869_vm3 = vmneg %vm5123_vm7  ;;  %v2855_v2 = vpack.c.bf16 %v1654_v13, %v1655_v40  ;;  %v1638_v18 = vrot.slane %v4611_v20, 1  ;;  %v1652_v26 = vsel %vm1640_vm2, %v1627_v61, %v1628_v57 }
 0x305   : > { %3308 = vmatprep.subr.bf16.mxu1 %v3512_v17  ;;  %3182 = vmatprep.mubr.bf16.mxu0 %v1733_v34  ;;  %vm4682_vm1 = vmpackc.low %vm2853_vm0, %vm3767_vm14  ;;  %v1644_v62 = vsel %vm1640_vm2, %v1635_v0, %v1636_v51  ;;  %v1653_v24 = vsel %vm1640_vm2, %v1626_v35, %v1627_v61  ;;  %v1645_v3 = vsel %vm1640_vm2, %v1634_v52, %v1635_v0  ;;  %v1631_v43 = vrot.slane %v4530_v19, 1 }
 0x306   : > { %3214 = vmatprep.mubr.msk.bf16.mxu1 %vm2830_vm4, %v2831_v28  ;;  %v1646_v10 = vsel %vm1640_vm2, %v1633_v58, %v1634_v52  ;;  %v1647_v23 = vsel %vm1640_vm2, %v1632_v39, %v1633_v58  ;;  %vm2857_vm4 = vmneg %vm5124_vm9  ;;  %v1650_v34 = vsel %vm1640_vm2, %v1629_v41, %v1630_v14  ;;  %v1651_v11 = vsel %vm1640_vm2, %v1628_v57, %v1629_v41 }
 0x307   : > { %3229 = vmatpush3.bf16.msra.mxu0 %v3512_v17  ;;  %v2871_v27 = vpack.c.bf16 %v1646_v10, %v1647_v23  ;;  %vm4705_vm5 = vmpackc.low %vm2857_vm4, %vm3767_vm14  ;;  %v1642_v42 = vsel %vm1640_vm2, %v1637_v45, %v1638_v18  ;;  %v1643_v46 = vsel %vm1640_vm2, %v1636_v51, %v1637_v45  ;;  %v2859_v28 = vpack.c.bf16 %v1652_v26, %v1653_v24 }
 0x308   : > { %3316 = vmatpush3.bf16.msra.mxu1 %v3512_v17  ;;  %3230 = vmatprep.subr.bf16.mxu0 %v3513_v49  ;;  %vm5132_vm13 = vnez %v5066_v47  ;;  %vm2874_vm12 = vmpackc.low %vm2873_vm15, %vm3767_vm14  ;;  %v2875_v32 = vpack.c.bf16 %v1644_v62, %v1645_v3  ;;  %v2863_v37 = vpack.c.bf16 %v1650_v34, %v1651_v11  ;;  %v2879_v9 = vpack.c.bf16 %v1642_v42, %v1643_v46 }
 0x309   : > { %3309 = vmatprep.subr.bf16.mxu1 %v3513_v49  ;;  %v1639_v50 = vrot.slane %v4451_v12, 1  ;;  %v1648_v47 = vsel %vm1640_vm2, %v1631_v43, %v1632_v39  ;;  %v1649_v19 = vsel %vm1640_vm2, %v1630_v14, %v1631_v43  ;;  %vm5134_vm4 = vnez %v5068_v48 }
 0x30a   : > { %3183 = vmatmul.mubr.bf16.gmra.mxu0 %v1734_v31  ;;  %v2867_v4 = vpack.c.bf16 %v1648_v47, %v1649_v19 }
 0x30b   : > { %3215 = vmatmul.mubr.msk.bf16.gmra.mxu1 %vm4616_vm8, %v2835_v55  ;;  %3231 = vmatpush3.bf16.msra.mxu0 %v3513_v49  ;;  %vm4689_vm8 = vmpackc.low %vm2869_vm3, %vm3767_vm14  ;;  %vm5133_vm3 = vnez %v5060_v44  ;;  %v1641_v12 = vsel %vm1640_vm2, %v1638_v18, %v1639_v50 }
 0x30c   : > { %3317 = vmatpush3.bf16.msra.mxu1 %v3513_v49  ;;  %3232 = vmatprep.subr.bf16.mxu0 %v3514_v7  ;;  %vm2865_vm9 = vmneg %vm5133_vm3  ;;  %v1656_v49 = vsel %vm1640_vm2, %v1639_v50, %v1624_v22 }
 0x30d   : > { %3310 = vmatprep.subr.bf16.mxu1 %v3514_v7  ;;  %3186 = vmatprep.mubr.bf16.mxu0 %v1735_v59  ;;  %v2883_v54 = vpack.c.bf16 %v1656_v49, %v1641_v12 }
 0x30e   : > { %3218 = vmatprep.mubr.msk.bf16.mxu1 %vm2838_vm6, %v2839_v25  ;;  %vm2861_vm6 = vmneg %vm5131_vm11 }
 0x30f   : > { %3233 = vmatpush3.bf16.msra.mxu0 %v3514_v7  ;;  %vm2862_vm0 = vmpackc.low %vm2861_vm6, %vm3767_vm14 }
 0x310   : > { %3318 = vmatpush3.bf16.msra.mxu1 %v3514_v7  ;;  %3234 = vmatprep.subr.bf16.mxu0 %v3515_v5 }
 0x311   : > { %3311 = vmatprep.subr.bf16.mxu1 %v3515_v5 }
 0x312   : > { %3187 = vmatmul.mubr.bf16.gmra.mxu0 %v1736_v33 }
 0x313   : > { %3219 = vmatmul.mubr.msk.bf16.gmra.mxu1 %vm4653_vm10, %v2843_v36  ;;  %3235 = vmatpush3.bf16.msra.mxu0 %v3515_v5  ;;  %vm2877_vm10 = vmneg %vm5132_vm13 }
 0x314   : > { %3319 = vmatpush3.bf16.msra.mxu1 %v3515_v5  ;;  %3236 = vmatprep.subr.bf16.mxu0 %v3516_v60  ;;  %vm2878_vm7 = vmpackc.low %vm2877_vm10, %vm3767_vm14 }
 0x315   : > { %3312 = vmatprep.subr.bf16.mxu1 %v3516_v60  ;;  %3238 = vmatprep.mubr.msk.bf16.mxu0 %vm4682_vm1, %v2855_v2  ;;  %vm2881_vm1 = vmneg %vm5134_vm4 }
 0x316   : > { %3246 = vmatprep.mubr.msk.bf16.mxu1 %vm4689_vm8, %v2871_v27  ;;  %vm2866_vm8 = vmpackc.low %vm2865_vm9, %vm3767_vm14 }
 0x317   : > { %3237 = vmatpush3.bf16.msra.mxu0 %v3516_v60 }
 0x318   : > { %3320 = vmatpush3.bf16.msra.mxu1 %v3516_v60 }
 0x31a   : > { %3239 = vmatmul.mubr.msk.bf16.vlgmr.msra.gmra.mxu0 %vm4705_vm5, %v2859_v28  ;;  %vm2882_vm5 = vmpackc.low %vm2881_vm1, %vm3767_vm14  ;;  %vm2306_vm14 = vcmask 1040384  }
 0x31b   : > { %3247 = vmatmul.mubr.msk.bf16.vlgmr.msra.gmra.mxu1 %vm2874_vm12, %v2875_v32  ;;  %3242 = vmatprep.mubr.msk.bf16.mxu0 %vm2862_vm0, %v2863_v37 }
 0x31c   : > { %3250 = vmatprep.mubr.msk.bf16.mxu1 %vm2878_vm7, %v2879_v9 }
 0x322   : > { %3243 = vmatmul.mubr.msk.bf16.gmra.mxu0 %vm2866_vm8, %v2867_v4 }
 0x323   : > { %3251 = vmatmul.mubr.msk.bf16.gmra.mxu1 %vm2882_vm5, %v2883_v54 }
 0x3ba   : > { %v3176_v44 = vpop.f32.mrf.mxu0 }
 0x3bb   : > { %v3208_v20 = vpop.f32.mrf.mxu1 }
 0x3bc   : > { %v1836_v31 = vpop.f32.mrf.mxu0  ;;  %v1990_v36 = vadd.f32 %v3208_v20, %v3176_v44 }
 0x3bd   : > { %v1981_v53 = vpop.f32.mrf.mxu1 }
 0x3be   : > { %v3177_v55 = vpop.f32.mrf.mxu0  ;;  %v1982_v41 = vadd.f32 %v1981_v53, %v1836_v31 }
 0x3bf   : > { %v3209_v29 = vpop.f32.mrf.mxu1 }
 0x3c0   : > { %v1839_v38 = vpop.f32.mrf.mxu0  ;;  %v1993_v17 = vadd.f32 %v3209_v29, %v3177_v55 }
 0x3c1   : > { %v1984_v1 = vpop.f32.mrf.mxu1 }
 0x3c2   : > { %v3180_v15 = vpop.f32.mrf.mxu0  ;;  %v1985_v3 = vadd.f32 %v1984_v1, %v1839_v38 }
 0x3c3   : > { %v3212_v7 = vpop.f32.mrf.mxu1 }
 0x3c4   : > { %v1852_v48 = vpop.f32.mrf.mxu0  ;;  %v2006_v32 = vadd.f32 %v3212_v7, %v3180_v15 }
 0x3c5   : > { %v1997_v21 = vpop.f32.mrf.mxu1 }
 0x3c6   : > { %v3181_v59 = vpop.f32.mrf.mxu0  ;;  %v1998_v9 = vadd.f32 %v1997_v21, %v1852_v48 }
 0x3c7   : > { %v3213_v22 = vpop.f32.mrf.mxu1 }
 0x3c8   : > { %v4754_v56 = vpop.f32.mrf.mxu0  ;;  %v2009_v20 = vadd.f32 %v3213_v22, %v3181_v59 }
 0x3c9   : > { %v4756_v25 = vpop.f32.mrf.mxu1 }
 0x3ca   : > { %v3184_v35 = vpop.f32.mrf.mxu0  ;;  %v2001_v48 = vadd.f32 %v4756_v25, %v4754_v56 }
 0x3cb   : > { %v3216_v39 = vpop.f32.mrf.mxu1 }
 0x3cc   : > { %v1868_v58 = vpop.f32.mrf.mxu0  ;;  %v2022_v23 = vadd.f32 %v3216_v39, %v3184_v35 }
 0x3cd   : > { %v2013_v52 = vpop.f32.mrf.mxu1 }
 0x3ce   : > { %v3185_v6 = vpop.f32.mrf.mxu0  ;;  %v2014_v2 = vadd.f32 %v2013_v52, %v1868_v58 }
 0x3cf   : > { %v3217_v8 = vpop.f32.mrf.mxu1 }
 0x3d0   : > { %v1871_v5 = vpop.f32.mrf.mxu0  ;;  %v2025_v62 = vadd.f32 %v3217_v8, %v3185_v6 }
 0x3d1   : > { %v2016_v61 = vpop.f32.mrf.mxu1 }
 0x3d2   : > { %v3188_v57 = vpop.f32.mrf.mxu0  ;;  %v2017_v42 = vadd.f32 %v2016_v61, %v1871_v5 }
 0x3d3   : > { %v3220_v63 = vpop.f32.mrf.mxu1 }
 0x3d4   : > { %v1884_v0 = vpop.f32.mrf.mxu0  ;;  %v2038_v50 = vadd.f32 %v3220_v63, %v3188_v57 }
 0x3d5   : > { %v2029_v33 = vpop.f32.mrf.mxu1 }
 0x3d6   : > { %v3189_v13 = vpop.f32.mrf.mxu0  ;;  %v2030_v31 = vadd.f32 %v2029_v33, %v1884_v0 }
 0x3d7   : > { %v3221_v40 = vpop.f32.mrf.mxu1 }
 0x3d8   : > { %v4758_v51 = vpop.f32.mrf.mxu0  ;;  %v2041_v21 = vadd.f32 %v3221_v40, %v3189_v13 }
 0x3d9   : > { %v4760_v10 = vpop.f32.mrf.mxu1 }
 0x3da   : > { %v3240_v60 = vpop.f32.mrf.mxu0  ;;  %v2033_v8 = vadd.f32 %v4760_v10, %v4758_v51 }
 0x3db   : > { %v2216_v14 = vadd.f32 %v3240_v60, %v1990_v36  ;;  %v3248_v16 = vpop.f32.mrf.mxu1 }
 0x3dc   : > { %v4762_v45 = vadd.f32 %v3248_v16, %v2022_v23  ;;  %v2151_v18 = vpop.f32.mrf.mxu0 }
 0x3dd   : > { %2233 = vst [vmem:[%s4766_s18 + $0x10] sm:$0xff] %v2216_v14  ;;  %v2214_v27 = vadd.f32 %v2151_v18, %v1982_v41  ;;  %v2183_v26 = vpop.f32.mrf.mxu1  ;;  %v2271_v29 = vmul.f32 %v2216_v14, %v2216_v14 }
 0x3de   : > { %2241 = vst [vmem:[%s4766_s18 + $0x50] sm:$0xff] %v4762_v45  ;;  %v4771_v24 = vadd.f32 %v2183_v26, %v2014_v2  ;;  %v3241_v30 = vpop.f32.mrf.mxu0 }
 0x3df   : > { %2231 = vst [vmem:[%s4766_s18] sm:$0xff] %v2214_v27  ;;  %v2217_v34 = vadd.f32 %v3241_v30, %v1993_v17  ;;  %v3249_v11 = vpop.f32.mrf.mxu1  ;;  %v2269_v12 = vmul.f32 %v2214_v27, %v2214_v27 }
 0x3e0   : > { %2239 = vst [vmem:[%s4766_s18 + $0x40] sm:$0xff] %v4771_v24  ;;  %v4776_v46 = vadd.f32 %v3249_v11, %v2025_v62  ;;  %v2154_v28 = vpop.f32.mrf.mxu0  ;;  %v2277_v16 = vmul.f32 %v4771_v24, %v4771_v24  ;;  %v2279_v62 = vmul.f32 %v4762_v45, %v4762_v45 }
 0x3e1   : > { %2234 = vst [vmem:[%s4766_s18 + $0x18] sm:$0xff] %v2217_v34  ;;  %v2215_v37 = vadd.f32 %v2154_v28, %v1985_v3  ;;  %v2186_v43 = vpop.f32.mrf.mxu1  ;;  %v2272_v22 = vmul.f32 %v2217_v34, %v2217_v34 }
 0x3e2   : > { %2242 = vst [vmem:[%s4766_s18 + $0x58] sm:$0xff] %v4776_v46  ;;  %v2223_v47 = vadd.f32 %v2186_v43, %v2017_v42  ;;  %v3244_v19 = vpop.f32.mrf.mxu0 }
 0x3e3   : > { %2232 = vst [vmem:[%s4766_s18 + $0x8] sm:$0xff] %v2215_v37  ;;  %v2248_v49 = vadd.f32 %v2215_v37, %v2214_v27  ;;  %v2270_v4 = vmul.f32 %v2215_v37, %v2215_v37  ;;  %v2220_v54 = vadd.f32 %v3244_v19, %v2006_v32  ;;  %v3252_v44 = vpop.f32.mrf.mxu1 }
 0x3e4   : > { %2240 = vst [vmem:[%s4766_s18 + $0x48] sm:$0xff] %v2223_v47  ;;  %v2228_v53 = vadd.f32 %v3252_v44, %v2038_v50  ;;  %v2167_v55 = vpop.f32.mrf.mxu0  ;;  %v2278_v17 = vmul.f32 %v2223_v47, %v2223_v47 }
 0x3e5   : > { %v2249_v38 = vadd.f32 %v2248_v49, %v2216_v14  ;;  %v2285_v1 = vadd.f32 %v2270_v4, %v2269_v12  ;;  %2237 = vst [vmem:[%s4766_s18 + $0x30] sm:$0xff] %v2220_v54  ;;  %v2218_v15 = vadd.f32 %v2167_v55, %v1998_v9  ;;  %v2199_v7 = vpop.f32.mrf.mxu1  ;;  %v2275_v23 = vmul.f32 %v2220_v54, %v2220_v54 }
 0x3e6   : > { %2245 = vst [vmem:[%s4766_s18 + $0x70] sm:$0xff] %v2228_v53  ;;  %v2226_v35 = vadd.f32 %v2199_v7, %v2030_v31  ;;  %v3245_v59 = vpop.f32.mrf.mxu0  ;;  %v2283_v50 = vmul.f32 %v2228_v53, %v2228_v53  ;;  %v2247_v7 = vld [vmem:[#allocation5] sm:$0x3] }
 0x3e7   : > { %v2286_v39 = vadd.f32 %v2285_v1, %v2271_v29  ;;  %2235 = vst [vmem:[%s4766_s18 + $0x20] sm:$0xff] %v2218_v15  ;;  %v2250_v58 = vadd.f32 %v2249_v38, %v2217_v34  ;;  %v2221_v52 = vadd.f32 %v3245_v59, %v2009_v20  ;;  %v3253_v6 = vpop.f32.mrf.mxu1  ;;  %v2273_v61 = vmul.f32 %v2218_v15, %v2218_v15 }
 0x3e8   : > { %2243 = vst [vmem:[%s4766_s18 + $0x60] sm:$0xff] %v2226_v35  ;;  %v2229_v5 = vadd.f32 %v3253_v6, %v2041_v21  ;;  %v2170_v56 = vpop.f32.mrf.mxu0  ;;  %v2280_v34 = vmul.f32 %v4776_v46, %v4776_v46  ;;  %v2281_v28 = vmul.f32 %v2226_v35, %v2226_v35 }
 0x3e9   : > { %v2251_v25 = vadd.f32 %v2250_v58, %v2218_v15  ;;  %v2287_v57 = vadd.f32 %v2286_v39, %v2272_v22  ;;  %2238 = vst [vmem:[%s4766_s18 + $0x38] sm:$0xff] %v2221_v52  ;;  %v2219_v63 = vadd.f32 %v2170_v56, %v2001_v48  ;;  %v2202_v0 = vpop.f32.mrf.mxu1  ;;  %v2276_v10 = vmul.f32 %v2221_v52, %v2221_v52 }
 0x3ea   : > { %2246 = vst [vmem:[%s4766_s18 + $0x78] sm:$0xff] %v2229_v5  ;;  %v2227_v33 = vadd.f32 %v2202_v0, %v2033_v8  ;;  %v2284_v12 = vmul.f32 %v2229_v5, %v2229_v5 }
 0x3eb   : > { %v2288_v13 = vadd.f32 %v2287_v57, %v2273_v61  ;;  %2236 = vst [vmem:[%s4766_s18 + $0x28] sm:$0xff] %v2219_v63  ;;  %v2252_v40 = vadd.f32 %v2251_v25, %v2219_v63  ;;  %v2274_v36 = vmul.f32 %v2219_v63, %v2219_v63 }
 0x3ec   : > { %2244 = vst [vmem:[%s4766_s18 + $0x68] sm:$0xff] %v2227_v33  ;;  %v2282_v43 = vmul.f32 %v2227_v33, %v2227_v33 }
 0x3ed   : > { %v2253_v60 = vadd.f32 %v2252_v40, %v2220_v54  ;;  %v2289_v51 = vadd.f32 %v2288_v13, %v2274_v36 }
 0x3ef   : > { %v2254_v41 = vadd.f32 %v2253_v60, %v2221_v52  ;;  %v2290_v14 = vadd.f32 %v2289_v51, %v2275_v23 }
 0x3f1   : > { %v2255_v2 = vadd.f32 %v2254_v41, %v4771_v24  ;;  %v2291_v18 = vadd.f32 %v2290_v14, %v2276_v10 }
 0x3f3   : > { %v2292_v27 = vadd.f32 %v2291_v18, %v2277_v16  ;;  %v2256_v26 = vadd.f32 %v2255_v2, %v2223_v47 }
 0x3f5   : > { %v2257_v30 = vadd.f32 %v2256_v26, %v4762_v45  ;;  %v2293_v3 = vadd.f32 %v2292_v27, %v2278_v17 }
 0x3f7   : > { %v2258_v11 = vadd.f32 %v2257_v30, %v4776_v46  ;;  %v2294_v42 = vadd.f32 %v2293_v3, %v2279_v62 }
 0x3f9   : > { %v2259_v32 = vadd.f32 %v2258_v11, %v2226_v35  ;;  %v2295_v37 = vadd.f32 %v2294_v42, %v2280_v34 }
 0x3fb   : > { %v2260_v24 = vadd.f32 %v2259_v32, %v2227_v33  ;;  %v2296_v9 = vadd.f32 %v2295_v37, %v2281_v28 }
 0x3fd   : > { %v2261_v47 = vadd.f32 %v2260_v24, %v2228_v53  ;;  %v2297_v19 = vadd.f32 %v2296_v9, %v2282_v43 }
 0x3ff   : > { %v2262_v49 = vadd.f32 %v2261_v47, %v2229_v5  ;;  %v2298_v4 = vadd.f32 %v2297_v19, %v2283_v50 }
 0x401   : > { %v2263_v45 = vrot.slane %v2262_v49, 4  ;;  %v2299_v54 = vadd.f32 %v2298_v4, %v2284_v12 }
 0x403   : > { %v2264_v44 = vadd.f32 %v2263_v45, %v2262_v49  ;;  %v2300_v20 = vrot.slane %v2299_v54, 4 }
 0x405   : > { %v2265_v31 = vrot.slane %v2264_v44, 2  ;;  %v2301_v55 = vadd.f32 %v2300_v20, %v2299_v54 }
 0x407   : > { %v2266_v46 = vadd.f32 %v2265_v31, %v2264_v44  ;;  %v2302_v29 = vrot.slane %v2301_v55, 2 }
 0x409   : > { %v2267_v38 = vrot.slane %v2266_v46, 1  ;;  %v2303_v1 = vadd.f32 %v2302_v29, %v2301_v55 }
 0x40b   : > { %v2304_v15 = vrot.slane %v2303_v1, 1  ;;  %v2268_v48 = vadd.f32 %v2267_v38, %v2266_v46 }
 0x40d   : > { %v2305_v21 = vadd.f32 %v2304_v15, %v2303_v1 }
 0x40f   : > { %v2307_v53 = vsel %vm2306_vm14, %v2268_v48, %v2305_v21 }
 0x410   : > { %v2308_v35 = vadd.f32 %v2307_v53, %v2247_v7 }
 0x412   : > { %2309 = vst [vmem:[#allocation5] sm:$0x3] %v2308_v35 }
 0x413 PF: > { %p2885_p0 = scmp.ne.s32.totalorder %s3741_s25, 2 }
 0x414   : > { %p2886_p4 = scmp.ne.s32.totalorder (!%p2885_p0), %s3737_s24, 0 }
 0x415   : > { %2313 = sbr.rel (%p2885_p0) target bundleno = 1337 (0x539), region = 76 }
 0x41a   : > { %2316 = sbr.rel (%p2886_p4) target bundleno = 1312 (0x520), region = 80  ;;  %s5135_s9 = sld [smem:[#allocation32_spill]] (!%p2886_p4) }
 0x41f   : > { %v2335_v59 = vld [vmem:[#allocation16 + $0x78] sm:$0xff]  ;;  %v3768_v22 = vmov 0.0   ;;  %v2334_v39 = vld [vmem:[#allocation16 + $0x70] sm:$0xff]  ;;  %vm3769_vm2 = vmmov 0   ;;  %v2333_v58 = vld [vmem:[#allocation16 + $0x68] sm:$0xff] }
 0x420   : > { %3254 = vmatprep.subr.mxu0 %v3768_v22  ;;  %3286 = vmatprep.mubr.msk.f32.mxu0 %vm3769_vm2, %v3768_v22  ;;  %v2332_v52 = vld [vmem:[#allocation16 + $0x60] sm:$0xff]  ;;  %v2331_v6 = vld [vmem:[#allocation16 + $0x58] sm:$0xff]  ;;  %v2330_v8 = vld [vmem:[#allocation16 + $0x50] sm:$0xff] }
 0x421   : > { %3255 = vmatpush3.msra.mxu0 %v2335_v59  ;;  %v2329_v5 = vld [vmem:[#allocation16 + $0x48] sm:$0xff]  ;;  %v2328_v56 = vld [vmem:[#allocation16 + $0x40] sm:$0xff]  ;;  %v2327_v25 = vld [vmem:[#allocation16 + $0x38] sm:$0xff] }
 0x422   : > { %3256 = vmatprep.subr.mxu0 %v3768_v22  ;;  %v2326_v61 = vld [vmem:[#allocation16 + $0x30] sm:$0xff]  ;;  %v2325_v57 = vld [vmem:[#allocation16 + $0x28] sm:$0xff]  ;;  %v2324_v63 = vld [vmem:[#allocation16 + $0x20] sm:$0xff] }
 0x423   : > { %3257 = vmatpush3.msra.mxu0 %v2334_v39  ;;  %v2323_v0 = vld [vmem:[#allocation16 + $0x18] sm:$0xff]  ;;  %v2322_v33 = vld [vmem:[#allocation16 + $0x10] sm:$0xff]  ;;  %v2321_v13 = vld [vmem:[#allocation16 + $0x8] sm:$0xff] }
 0x424   : > { %3258 = vmatprep.subr.mxu0 %v3768_v22  ;;  %v2320_v40 = vld [vmem:[#allocation16] sm:$0xff]  ;;  %v2319_v36 = vld [vmem:[#allocation5] sm:$0x3] }
 0x425   : > { %3259 = vmatpush3.msra.mxu0 %v2333_v58  ;;  %v2317_v2 = vld [vmem:[%s5135_s9 + $0x2] sm:$0x1]  ;;  %v2318_v27 = vld [vmem:[%s5135_s9 + $0x3] sm:$0x1] }
 0x426   : > { %3260 = vmatprep.subr.mxu0 %v3768_v22 }
 0x427   : > { %3261 = vmatpush3.msra.mxu0 %v2332_v52 }
 0x428   : > { %3262 = vmatprep.subr.mxu0 %v3768_v22 }
 0x429   : > { %3263 = vmatpush3.msra.mxu0 %v2331_v6 }
 0x42a   : > { %3264 = vmatprep.subr.mxu0 %v3768_v22 }
 0x42b   : > { %3265 = vmatpush3.msra.mxu0 %v2330_v8 }
 0x42c   : > { %3266 = vmatprep.subr.mxu0 %v3768_v22 }
 0x42d   : > { %3267 = vmatpush3.msra.mxu0 %v2329_v5 }
 0x42e   : > { %3268 = vmatprep.subr.mxu0 %v3768_v22 }
 0x42f   : > { %3269 = vmatpush3.msra.mxu0 %v2328_v56 }
 0x430   : > { %3270 = vmatprep.subr.mxu0 %v3768_v22 }
 0x431   : > { %3271 = vmatpush3.msra.mxu0 %v2327_v25 }
 0x432   : > { %3272 = vmatprep.subr.mxu0 %v3768_v22 }
 0x433   : > { %3273 = vmatpush3.msra.mxu0 %v2326_v61 }
 0x434   : > { %3274 = vmatprep.subr.mxu0 %v3768_v22 }
 0x435   : > { %3275 = vmatpush3.msra.mxu0 %v2325_v57 }
 0x436   : > { %3276 = vmatprep.subr.mxu0 %v3768_v22 }
 0x437   : > { %3277 = vmatpush3.msra.mxu0 %v2324_v63 }
 0x438   : > { %3278 = vmatprep.subr.mxu0 %v3768_v22 }
 0x439   : > { %3279 = vmatpush3.msra.mxu0 %v2323_v0 }
 0x43a   : > { %3280 = vmatprep.subr.mxu0 %v3768_v22 }
 0x43b   : > { %3281 = vmatpush3.msra.mxu0 %v2322_v33 }
 0x43c   : > { %3282 = vmatprep.subr.mxu0 %v3768_v22 }
 0x43d   : > { %3283 = vmatpush3.msra.mxu0 %v2321_v13 }
 0x43e   : > { %3284 = vmatprep.subr.mxu0 %v3768_v22 }
 0x43f   : > { %3285 = vmatpush3.msra.mxu0 %v2320_v40 }
 0x440   : > { %3287 = vmatmul.mubr.f32.vlgmr.msra.gmra.mxu0 %v2319_v36 }
 0x500   : > { %v2402_v23 = vpop.f32.mrf.mxu0 }
 0x501   : > { %v2406_v60 = vmul.f32 %v2402_v23, %v2402_v23 }
 0x502   : > { %v3288_v51 = vpop.f32.mrf.mxu0 }
 0x503   : > { %v2408_v10 = vrot.slane %v2406_v60, 7 }
 0x505   : > { %v2410_v41 = vsub.f32 %v2402_v23, %v2408_v10 }
 0x507   : > { %v2411_v14 = vadd.f32 1e-05, %v2410_v41 }
 0x509   : > { %3517 = vrsqrt.f32 %v2411_v14 }
 0x516   : > { %v3518_v16 = vpop.eup %3517 }
 0x517   : > { %v2414_v18 = vrot.slane %v3518_v16, 1 }
 0x519   : > { %v2416_v17 = vmul.f32 %v2414_v18, %v2317_v2 }
 0x51b   : > { %v2417_v26 = vmul.f32 %v2416_v17, %v2402_v23  ;;  %2419 = vst [vmem:[#allocation8] sm:$0x1] %v2416_v17 }
 0x51d   : > { %v2418_v62 = vsub.f32 %v2318_v27, %v2417_v26 }
 0x51f   : > { %2420 = vst [vmem:[#allocation9] sm:$0x1] %v2418_v62 }
 0x520 PF: > { %s2887_s8 = sshll.u32 %s3737_s24, 7  ;;  %v2485_v11 = vld [vmem:[%s3979_s21] sm:$0xff]  ;;  %v2486_v24 = vld [vmem:[%s3979_s21 + $0x8] sm:$0xff]  ;;  %v2487_v47 = vld [vmem:[%s3979_s21 + $0x10] sm:$0xff] }
 0x521   : > { %s4817_s11 = scalar_lea.vmem [#allocation3], %s2887_s8  ;;  %v2488_v20 = vld [vmem:[%s3979_s21 + $0x18] sm:$0xff]  ;;  %v2489_v31 = vld [vmem:[%s3979_s21 + $0x20] sm:$0xff]  ;;  %v2490_v1 = vld [vmem:[%s3979_s21 + $0x28] sm:$0xff] }
 0x522   : > { %v4813_v30 = vld [vmem:[#allocation8] ss:$0 sm:$0xff]  ;;  %v2424_v42 = vld [vmem:[%s4817_s11 + $0x8] sm:$0xff]  ;;  %v2425_v28 = vld [vmem:[%s4817_s11 + $0x10] sm:$0xff] }
 0x523   : > { %v2423_v34 = vld [vmem:[%s4817_s11] sm:$0xff]  ;;  %v2447_v37 = vmul.f32 %v4813_v30, %v2424_v42  ;;  %v2448_v43 = vmul.f32 %v4813_v30, %v2425_v28  ;;  %v2426_v9 = vld [vmem:[%s4817_s11 + $0x18] sm:$0xff]  ;;  %v2428_v49 = vld [vmem:[%s4817_s11 + $0x28] sm:$0xff] }
 0x524   : > { %v2446_v32 = vmul.f32 %v4813_v30, %v2423_v34  ;;  %v2427_v50 = vld [vmem:[%s4817_s11 + $0x20] sm:$0xff]  ;;  %v2449_v19 = vmul.f32 %v4813_v30, %v2426_v9  ;;  %v2429_v4 = vld [vmem:[%s4817_s11 + $0x30] sm:$0xff]  ;;  %v2451_v55 = vmul.f32 %v4813_v30, %v2428_v49  ;;  %v2430_v46 = vld [vmem:[%s4817_s11 + $0x38] sm:$0xff] }
 0x525   : > { %v2450_v12 = vmul.f32 %v4813_v30, %v2427_v50  ;;  %v2452_v15 = vmul.f32 %v4813_v30, %v2429_v4  ;;  %v2453_v7 = vmul.f32 %v4813_v30, %v2430_v46  ;;  %v2491_v59 = vld [vmem:[%s3979_s21 + $0x30] sm:$0xff]  ;;  %v2492_v22 = vld [vmem:[%s3979_s21 + $0x38] sm:$0xff]  ;;  %v2432_v5 = vld [vmem:[%s4817_s11 + $0x48] sm:$0xff] }
 0x526   : > { %v4815_v3 = vld [vmem:[#allocation9] ss:$0 sm:$0xff]  ;;  %v2433_v56 = vld [vmem:[%s4817_s11 + $0x50] sm:$0xff]  ;;  %v2434_v0 = vld [vmem:[%s4817_s11 + $0x58] sm:$0xff]  ;;  %v2455_v41 = vmul.f32 %v4813_v30, %v2432_v5 }
 0x527   : > { %v2469_v45 = vadd.f32 %v4815_v3, %v2446_v32  ;;  %v2470_v54 = vadd.f32 %v4815_v3, %v2447_v37  ;;  %v2471_v44 = vadd.f32 %v4815_v3, %v2448_v43  ;;  %v2472_v29 = vadd.f32 %v4815_v3, %v2449_v19  ;;  %v2431_v8 = vld [vmem:[%s4817_s11 + $0x40] sm:$0xff]  ;;  %v2436_v60 = vld [vmem:[%s4817_s11 + $0x68] sm:$0xff]  ;;  %v2437_v16 = vld [vmem:[%s4817_s11 + $0x70] sm:$0xff] }
 0x528   : > { %v2473_v38 = vadd.f32 %v4815_v3, %v2450_v12  ;;  %v2474_v35 = vadd.f32 %v4815_v3, %v2451_v55  ;;  %v2475_v52 = vadd.f32 %v4815_v3, %v2452_v15  ;;  %v2476_v6 = vadd.f32 %v4815_v3, %v2453_v7  ;;  %v2435_v33 = vld [vmem:[%s4817_s11 + $0x60] sm:$0xff]  ;;  %v2438_v2 = vld [vmem:[%s4817_s11 + $0x78] sm:$0xff]  ;;  %v2493_v27 = vld [vmem:[%s3979_s21 + $0x40] sm:$0xff] }
 0x529   : > { %v2501_v48 = vadd.f32 %v2485_v11, %v2469_v45  ;;  %v2502_v21 = vadd.f32 %v2486_v24, %v2470_v54  ;;  %v2503_v53 = vadd.f32 %v2487_v47, %v2471_v44  ;;  %v2504_v39 = vadd.f32 %v2488_v20, %v2472_v29  ;;  %v2494_v26 = vld [vmem:[%s3979_s21 + $0x48] sm:$0xff]  ;;  %v2495_v62 = vld [vmem:[%s3979_s21 + $0x50] sm:$0xff]  ;;  %v2496_v37 = vld [vmem:[%s3979_s21 + $0x58] sm:$0xff] }
 0x52a   : > { %v2505_v58 = vadd.f32 %v2489_v31, %v2473_v38  ;;  %v2506_v63 = vadd.f32 %v2490_v1, %v2474_v35  ;;  %v2507_v36 = vadd.f32 %v2491_v59, %v2475_v52  ;;  %v2508_v23 = vadd.f32 %v2492_v22, %v2476_v6  ;;  %v2497_v24 = vld [vmem:[%s3979_s21 + $0x60] sm:$0xff]  ;;  %v2498_v47 = vld [vmem:[%s3979_s21 + $0x68] sm:$0xff]  ;;  %v2499_v44 = vld [vmem:[%s3979_s21 + $0x70] sm:$0xff] }
 0x52b   : > { %v2517_v25 = vmax.f32 %v2501_v48, 0.0  ;;  %v2518_v61 = vmax.f32 %v2502_v21, 0.0  ;;  %v2519_v57 = vmax.f32 %v2503_v53, 0.0  ;;  %v2520_v13 = vmax.f32 %v2504_v39, 0.0  ;;  %v2500_v20 = vld [vmem:[%s3979_s21 + $0x78] sm:$0xff] }
 0x52c   : > { %v2521_v40 = vmax.f32 %v2505_v58, 0.0  ;;  %v2522_v51 = vmax.f32 %v2506_v63, 0.0  ;;  %v2454_v10 = vmul.f32 %v4813_v30, %v2431_v8  ;;  %v2456_v14 = vmul.f32 %v4813_v30, %v2433_v56 }
 0x52d   : > { %2533 = vst [vmem:[%s4087_s6] sm:$0xff] %v2517_v25  ;;  %2534 = vst [vmem:[%s4087_s6 + $0x8] sm:$0xff] %v2518_v61  ;;  %v2523_v18 = vmax.f32 %v2507_v36, 0.0  ;;  %v2524_v17 = vmax.f32 %v2508_v23, 0.0  ;;  %v2457_v34 = vmul.f32 %v4813_v30, %v2434_v0  ;;  %v2458_v11 = vmul.f32 %v4813_v30, %v2435_v33 }
 0x52e   : > { %2535 = vst [vmem:[%s4087_s6 + $0x10] sm:$0xff] %v2519_v57  ;;  %2536 = vst [vmem:[%s4087_s6 + $0x18] sm:$0xff] %v2520_v13  ;;  %v2477_v42 = vadd.f32 %v4815_v3, %v2454_v10  ;;  %v2478_v28 = vadd.f32 %v4815_v3, %v2455_v41  ;;  %v2479_v32 = vadd.f32 %v4815_v3, %v2456_v14 }
 0x52f   : > { %2537 = vst [vmem:[%s4087_s6 + $0x20] sm:$0xff] %v2521_v40  ;;  %2538 = vst [vmem:[%s4087_s6 + $0x28] sm:$0xff] %v2522_v51  ;;  %v2459_v43 = vmul.f32 %v4813_v30, %v2436_v60  ;;  %v2480_v9 = vadd.f32 %v4815_v3, %v2457_v34  ;;  %v2481_v50 = vadd.f32 %v4815_v3, %v2458_v11 }
 0x530   : > { %2539 = vst [vmem:[%s4087_s6 + $0x30] sm:$0xff] %v2523_v18  ;;  %2540 = vst [vmem:[%s4087_s6 + $0x38] sm:$0xff] %v2524_v17  ;;  %v2460_v19 = vmul.f32 %v4813_v30, %v2437_v16  ;;  %v2461_v12 = vmul.f32 %v4813_v30, %v2438_v2  ;;  %v2509_v49 = vadd.f32 %v2493_v27, %v2477_v42 }
 0x531   : > { %v2510_v4 = vadd.f32 %v2494_v26, %v2478_v28  ;;  %v2511_v45 = vadd.f32 %v2495_v62, %v2479_v32  ;;  %v2482_v54 = vadd.f32 %v4815_v3, %v2459_v43  ;;  %v2512_v31 = vadd.f32 %v2496_v37, %v2480_v9 }
 0x532   : > { %v2513_v55 = vadd.f32 %v2497_v24, %v2481_v50  ;;  %v2483_v46 = vadd.f32 %v4815_v3, %v2460_v19  ;;  %v2484_v29 = vadd.f32 %v4815_v3, %v2461_v12  ;;  %v2525_v38 = vmax.f32 %v2509_v49, 0.0 }
 0x533   : > { %v2526_v30 = vmax.f32 %v2510_v4, 0.0  ;;  %v2527_v1 = vmax.f32 %v2511_v45, 0.0  ;;  %v2514_v15 = vadd.f32 %v2498_v47, %v2482_v54  ;;  %v2528_v7 = vmax.f32 %v2512_v31, 0.0 }
 0x534   : > { %v2529_v48 = vmax.f32 %v2513_v55, 0.0  ;;  %v2515_v21 = vadd.f32 %v2499_v44, %v2483_v46  ;;  %v2516_v53 = vadd.f32 %v2500_v20, %v2484_v29  ;;  %2541 = vst [vmem:[%s4087_s6 + $0x40] sm:$0xff] %v2525_v38 }
 0x535   : > { %2542 = vst [vmem:[%s4087_s6 + $0x48] sm:$0xff] %v2526_v30  ;;  %2543 = vst [vmem:[%s4087_s6 + $0x50] sm:$0xff] %v2527_v1  ;;  %v2530_v35 = vmax.f32 %v2514_v15, 0.0 }
 0x536   : > { %2544 = vst [vmem:[%s4087_s6 + $0x58] sm:$0xff] %v2528_v7  ;;  %2545 = vst [vmem:[%s4087_s6 + $0x60] sm:$0xff] %v2529_v48  ;;  %v2531_v59 = vmax.f32 %v2515_v21, 0.0  ;;  %v2532_v22 = vmax.f32 %v2516_v53, 0.0 }
 0x537   : > { %2546 = vst [vmem:[%s4087_s6 + $0x68] sm:$0xff] %v2530_v35 }
 0x538   : > { %2547 = vst [vmem:[%s4087_s6 + $0x70] sm:$0xff] %v2531_v59  ;;  %2548 = vst [vmem:[%s4087_s6 + $0x78] sm:$0xff] %v2532_v22 }
 0x539 PF: > { %s5136_s21 = sld [smem:[#allocation26_spill]]  ;;  %p2557_p6 = scmp.eq.s32.totalorder %s3741_s25, 2 }
 0x53a   : > { %s2565_s15 = sshll.u32 %s4087_s6, 4  ;;  %s5137_s13 = sld [smem:[#allocation33_spill]]  ;;  %s4902_s15 = int_to_ptr.vmem [resolvable:$true] %s2565_s15 }
 0x53b   : > { %s5159_s24 = smov (!%p2557_p6, %s3737_s24), 0  ;;  %s4911_s2 = scalar_lea.sflag [#allocation12], %s306_s26 }
 0x53c   : > { %s2896_s29 = sshll.u32 %s5159_s24, 11  ;;  %s3625_s17 = scalar_lea.vmem %s4902_s15, 2048 }
 0x53d   : > { %p3626_p13 = scmp.ne.s32.totalorder %s4902_s15, %s3625_s17  ;;  %s3770_s25 = smov [#allocation18]  }
 0x53e   : > { %s3629_s6 = sshll.u32 %s3770_s25, 4  ;;  %s3630_s6 = int_to_ptr.vmem [resolvable:$false] %s3629_s6 }
 0x53f   : > { %p5138_p10 = scmp.ne.s32.totalorder %s5136_s21, 0  ;;  %s3631_s5 = scalar_lea.vmem %s3630_s6, 4096 }
 0x540   : > { %s4907_s10 = scalar_lea.hbm %s5137_s13, %s2896_s29  ;;  %p3632_p9 = scmp.lt.s32.totalorder %s4902_s15, %s3630_s6 }
 0x541   : > { %p3627_p5 = pnand %p3626_p13, %p5138_p10  ;;  %p3633_p11 = scmp.lt.s32.totalorder %s3631_s5, %s3625_s17 }
 0x543   : > { %p3628_p8 = pneg %p3627_p5  ;;  %p3634_p12 = por %p3633_p11, %p3632_p9 }
 0x545   : > { %p3635_p2 = pnand %p3634_p12, %p3628_p8 }
 0x547   : > { %3638 = shalt.err (!%p3635_p2)
}
 0x548   : > { %s3639_s24 = scalar_lea.hbm %s4907_s10, 2048  ;;  %s3643_s4 = scalar_lea.hbm %s5137_s13, 4096 }
 0x549   : > { %p3640_p1 = scmp.ne.s32.totalorder %s4907_s10, %s3639_s24  ;;  %p3644_p0 = scmp.lt.s32.totalorder %s4907_s10, %s5137_s13 }
 0x54a   : > { %p3645_p4 = scmp.lt.s32.totalorder %s3643_s4, %s3639_s24 }
 0x54b   : > { %p3641_p3 = pnand %p3640_p1, %p5138_p10 }
 0x54c   : > { %p3646_p6 = por %p3645_p4, %p3644_p0 }
 0x54d   : > { %p3642_p7 = pneg %p3641_p3 }
 0x54f   : > { %p3647_p13 = pnand %p3646_p6, %p3642_p7 }
 0x551   : > { %3650 = shalt.err (!%p3647_p13)
}
 0x552   : > { %s3771_s7 = smov 128   ;;  %s3772_s14 = smov 8  }
 0x553   : > { %3335 = dma.vmem_to_hbm [thread:$0]  (%p5138_p10), %s4902_s15, 2048, %s4907_s10, %s4911_s2, %s3771_s7, %s3771_s7, %s3772_s14  }
 0x554 PF: > { %s5139_s8 = sld [smem:[#allocation23_spill]]  ;;  %p3362_p5 = scmp.ge.s32.totalorder %s3753_s28, 2 }
 0x555   : > { %s5140_s11 = sld [smem:[#allocation27_spill]] }
 0x55a   : > { %s2580_s29 = sand.u32 1, %s5139_s8  }
 0x55b   : > { %p5141_p8 = scmp.ne.s32.totalorder %s5140_s11, 0  ;;  %s2581_s16 = scalar_lea.sflag [#allocation12], %s2580_s29 }
 0x55d   : > { %p3352_p9 = pnand %p3362_p5, %p5141_p8 }
 0x55f   : > { %p3353_p11 = pneg %p3352_p9 }
 0x561   : > { %3708 = dma.done.wait (%p3353_p11), %s2581_s16, 2048  }
 0x562   : > { %3710 = vsyncadd (%p3353_p11), %s2581_s16, 4294965248  ;;  %s23_s28 = sadd.s32 1, %s3753_s28   ;;  %s5142_s24 = sld [smem:[#allocation24_spill]] }
 0x563   : > { %p20_p12 = scmp.ge.s32.totalorder %s23_s28, 8   ;;  %s5143_s25 = sld [smem:[#allocation25_spill]] }
 0x564   : > { %s5144_s27 = sld [smem:[#allocation28_spill]]  ;;  %s5145_s18 = smov %s3717_s19 }
 0x565   : > { %s5146_s19 = smov %s3721_s20  ;;  %s5147_s20 = smov %s3956_s3 }
 0x566   : > { %s5148_s21 = smov %s3729_s22  ;;  %s5149_s22 = smov %s3733_s23 }
 0x567   : > { %s5150_s23 = smov %s3951_s1  ;;  %s5151_s26 = smov %s5153_s12 }
 0x568   :  { %22 = sbr.rel (!%p20_p12) target bundleno = 17 (0x11), region = 129 }
 0x56d   :  { %2586 = vsyncpa [#allocation11], 1 }
 0x56e   :  { %2588 = vsyncpa [#allocation11 + $0x1], 1 }
 0x56f   :  { %2589 = vsyncpa [#allocation14], 1 }
 0x570   :  { %2590 = vsyncpa [#allocation17], 1 }
 0x571   :  { %2591 = vsyncpa [#allocation12], 1 }
 0x572   :  { %2593 = vsyncpa [#allocation12 + $0x1], 1 }

</bundles_post_ra>
